<compile_context>
chip_gen: v7x
topology: tpu7x:2x2x1
jax: 0.10.0
libtpu: 0.0.40
codegen_flags: <defaults>
</compile_context>

<pallas_src>
import functools

import jax
import jax.numpy as jnp
from jax import lax
from jax.experimental import pallas as pl
from jax.experimental.pallas import tpu as pltpu


# --------------------------------------------------------------------------------------
# Generation-dependent tile table
# --------------------------------------------------------------------------------------
def _select_tiles():
  """v5e/v6e have 128 MiB VMEM -> big tiles; v7x has 64 MiB -> smaller tiles."""
  vmem = 64 * 1024 * 1024
  try:
    info = pltpu.get_tpu_info()
    vmem = int(getattr(info, "vmem_capacity_bytes", vmem) or vmem)
  except Exception:
    pass
  if vmem >= 100 * 1024 * 1024:
    return dict(tm=256, tn=1024, tk=1024, ti=512, tseq=512, norm_tm=512,
                vmem_limit=96 * 1024 * 1024)
  return dict(tm=256, tn=512, tk=512, ti=256, tseq=256, norm_tm=256,
              vmem_limit=44 * 1024 * 1024)


_CFG = _select_tiles()
_TM = _CFG["tm"]            # token (M) tile
_TN = _CFG["tn"]            # output-feature tile (generic matmul)
_TK = _CFG["tk"]            # contraction tile (k-tiled fallback only)
_TI = _CFG["ti"]            # intermediate-dim tile (MLP / MoE experts)
_TSEQ = _CFG["tseq"]        # flash-attention q/kv tile
_NORM_TM = _CFG["norm_tm"]  # rows per norm tile
_VMEM_LIMIT = _CFG["vmem_limit"]


def _cp(*sem):
  return pltpu.CompilerParams(dimension_semantics=sem,
                              vmem_limit_bytes=_VMEM_LIMIT)


def _round_up(x, m):
  return ((x + m - 1) // m) * m


def _pad_axis(x, target, axis):
  pad = target - x.shape[axis]
  if pad == 0:
    return x
  widths = [(0, 0)] * x.ndim
  widths[axis] = (0, pad)
  return jnp.pad(x, widths)


def _rms_normalize(x, g_ref, eps, out_dtype):
  xf = x.astype(jnp.float32)
  var = jnp.mean(xf * xf, axis=-1, keepdims=True)
  return (xf * lax.rsqrt(var + eps)).astype(out_dtype) * g_ref[...]


# --------------------------------------------------------------------------------------
# Generic matmul. Full-K path (K grid axis collapsed; optional fused RMSNorm prologue
# and residual epilogue) + k-tiled fallback for very large K.
# --------------------------------------------------------------------------------------
def _make_matmul_kernel(has_rms, has_res, rms_eps):
  def kernel(*refs):
    idx = 0
    x_ref = refs[idx]; idx += 1
    w_ref = refs[idx]; idx += 1
    g_ref = None
    if has_rms:
      g_ref = refs[idx]; idx += 1
    r_ref = None
    if has_res:
      r_ref = refs[idx]; idx += 1
    o_ref = refs[idx]

    x = x_ref[...]
    if has_rms:
      x = _rms_normalize(x, g_ref, rms_eps, x_ref.dtype)
    acc = jnp.dot(x, w_ref[...], preferred_element_type=jnp.float32)
    if has_res:
      acc = acc + r_ref[...].astype(jnp.float32)
    o_ref[...] = acc.astype(o_ref.dtype)
  return kernel


def _make_matmul_ktiled_kernel(has_res):
  def kernel(*refs):
    x_ref, w_ref = refs[0], refs[1]
    r_ref = refs[2] if has_res else None
    o_ref = refs[3] if has_res else refs[2]
    acc_ref = refs[-1]
    kk = pl.program_id(2)

    @pl.when(kk == 0)
    def _():
      acc_ref[...] = jnp.zeros_like(acc_ref)

    acc_ref[...] += jnp.dot(x_ref[...], w_ref[...],
                            preferred_element_type=jnp.float32)

    @pl.when(kk == pl.num_programs(2) - 1)
    def _():
      out = acc_ref[...]
      if has_res:
        out = out + r_ref[...].astype(jnp.float32)
      o_ref[...] = out.astype(o_ref.dtype)
  return kernel


def pallas_matmul(x, w, residual=None, rms_weight=None, rms_eps=1e-5):
  m, k = x.shape
  n = w.shape[1]
  itemsize = jnp.dtype(x.dtype).itemsize
  tm = min(_TM, _round_up(m, 8))
  mp = _round_up(m, tm)
  tn = n if n <= _TN else _TN
  np_ = _round_up(n, tn)
  # Full-K contraction when the (tm,K)+(K,tn) block set fits VMEM: collapses the
  # reduction axis, so x's block index is invariant across j and its DMA is dedup'd.
  full_k_bytes = (2 * (tm * k + k * tn) + 4 * tm * tn) * itemsize
  use_full_k = full_k_bytes < 0.6 * _VMEM_LIMIT

  xp = _pad_axis(x, mp, 0)
  if (not use_full_k) and rms_weight is not None:
    xp = pallas_rmsnorm(xp, rms_weight, rms_eps)   # fallback: pre-normalize
    rms_weight = None
  wp = _pad_axis(w, np_, 1)
  rp = None
  if residual is not None:
    rp = _pad_axis(_pad_axis(residual, mp, 0), np_, 1)

  if use_full_k:
    in_specs = [pl.BlockSpec((tm, k), lambda i, j: (i, 0)),
                pl.BlockSpec((k, tn), lambda i, j: (0, j))]
    args = [xp, wp]
    if rms_weight is not None:
      in_specs.append(pl.BlockSpec((1, k), lambda i, j: (0, 0)))
      args.append(rms_weight.reshape(1, k))
    if rp is not None:
      in_specs.append(pl.BlockSpec((tm, tn), lambda i, j: (i, j)))
      args.append(rp)
    out = pl.pallas_call(
        _make_matmul_kernel(rms_weight is not None, rp is not None, rms_eps),
        out_shape=jax.ShapeDtypeStruct((mp, np_), x.dtype),
        grid=(mp // tm, np_ // tn),
        in_specs=in_specs,
        out_specs=pl.BlockSpec((tm, tn), lambda i, j: (i, j)),
        compiler_params=_cp("parallel", "parallel"),
    )(*args)
  else:
    tk = min(_TK, _round_up(k, 128))
    kp = _round_up(k, tk)
    xp = _pad_axis(xp, kp, 1)
    wp = _pad_axis(wp, kp, 0)
    in_specs = [pl.BlockSpec((tm, tk), lambda i, j, kk: (i, kk)),
                pl.BlockSpec((tk, tn), lambda i, j, kk: (kk, j))]
    args = [xp, wp]
    if rp is not None:
      in_specs.append(pl.BlockSpec((tm, tn), lambda i, j, kk: (i, j)))
      args.append(rp)
    out = pl.pallas_call(
        _make_matmul_ktiled_kernel(rp is not None),
        out_shape=jax.ShapeDtypeStruct((mp, np_), x.dtype),
        grid=(mp // tm, np_ // tn, kp // tk),
        in_specs=in_specs,
        out_specs=pl.BlockSpec((tm, tn), lambda i, j, kk: (i, j)),
        scratch_shapes=[pltpu.VMEM((tm, tn), jnp.float32)],
        compiler_params=_cp("parallel", "parallel", "arbitrary"),
    )(*args)
  return out[:m, :n]


# --------------------------------------------------------------------------------------
# RMSNorm / L2-norm (row tiled; used standalone where not fused into a consumer)
# --------------------------------------------------------------------------------------
def _rmsnorm_kernel(x_ref, w_ref, o_ref, *, eps):
  x = x_ref[...].astype(jnp.float32)
  var = jnp.mean(x * x, axis=-1, keepdims=True)
  o_ref[...] = (x * lax.rsqrt(var + eps)).astype(o_ref.dtype) * w_ref[...]


def pallas_rmsnorm(x, w, eps):
  shape = x.shape
  h = shape[-1]
  x2 = x.reshape(-1, h)
  n = x2.shape[0]
  tm = min(_NORM_TM, _round_up(n, 8))
  mp = _round_up(n, tm)
  xp = _pad_axis(x2, mp, 0)
  out = pl.pallas_call(
      functools.partial(_rmsnorm_kernel, eps=eps),
      out_shape=jax.ShapeDtypeStruct((mp, h), x.dtype),
      grid=(mp // tm,),
      in_specs=[pl.BlockSpec((tm, h), lambda i: (i, 0)),
                pl.BlockSpec((1, h), lambda i: (0, 0))],
      out_specs=pl.BlockSpec((tm, h), lambda i: (i, 0)),
      compiler_params=_cp("parallel"),
  )(xp, w.reshape(1, h))
  return out[:n].reshape(shape)


def _l2norm_kernel(x_ref, o_ref, *, eps):
  x = x_ref[...].astype(jnp.float32)
  var = jnp.mean(x * x, axis=-1, keepdims=True)
  o_ref[...] = (x * lax.rsqrt(var + eps)).astype(o_ref.dtype)


def pallas_l2norm(x, eps):
  # TODO(synk): could be fused into the flash-attention prologue (q/k already in VMEM).
  shape = x.shape
  d = shape[-1]
  x2 = x.reshape(-1, d)
  n = x2.shape[0]
  tm = min(_NORM_TM, _round_up(n, 8))
  mp = _round_up(n, tm)
  xp = _pad_axis(x2, mp, 0)
  out = pl.pallas_call(
      functools.partial(_l2norm_kernel, eps=eps),
      out_shape=jax.ShapeDtypeStruct((mp, d), x.dtype),
      grid=(mp // tm,),
      in_specs=[pl.BlockSpec((tm, d), lambda i: (i, 0))],
      out_specs=pl.BlockSpec((tm, d), lambda i: (i, 0)),
      compiler_params=_cp("parallel"),
  )(xp)
  return out[:n].reshape(shape)


# --------------------------------------------------------------------------------------
# Fused MLP: (silu(x@Wg) * (x@Wu)) @ Wd, tiled over the intermediate dim.
# Optional fused RMSNorm prologue and residual accumulator init.
# --------------------------------------------------------------------------------------
def _make_mlp_kernel(has_rms, res_mode, rms_eps):
  # res_mode: 0 = no residual, 1 = residual from separate ref, 2 = residual == x (pre-norm)
  def kernel(*refs):
    idx = 0
    x_ref = refs[idx]; idx += 1
    wg_ref = refs[idx]; idx += 1
    wu_ref = refs[idx]; idx += 1
    wd_ref = refs[idx]; idx += 1
    g_ref = None
    if has_rms:
      g_ref = refs[idx]; idx += 1
    r_ref = None
    if res_mode == 1:
      r_ref = refs[idx]; idx += 1
    o_ref, acc_ref = refs[idx], refs[idx + 1]

    j = pl.program_id(1)

    @pl.when(j == 0)
    def _():
      if res_mode == 0:
        acc_ref[...] = jnp.zeros_like(acc_ref)
      elif res_mode == 1:
        acc_ref[...] = r_ref[...].astype(jnp.float32)
      else:
        acc_ref[...] = x_ref[...].astype(jnp.float32)

    x = x_ref[...]
    if has_rms:
      x = _rms_normalize(x, g_ref, rms_eps, x_ref.dtype)
    gate = jnp.dot(x, wg_ref[...], preferred_element_type=jnp.float32)
    up = jnp.dot(x, wu_ref[...], preferred_element_type=jnp.float32)
    act = (jax.nn.silu(gate) * up).astype(x_ref.dtype)
    acc_ref[...] += jnp.dot(act, wd_ref[...], preferred_element_type=jnp.float32)

    @pl.when(j == pl.num_programs(1) - 1)
    def _():
      o_ref[...] = acc_ref[...].astype(o_ref.dtype)
  return kernel


def pallas_mlp(x, wg, wu, wd, residual=None, residual_is_x=False,
               rms_weight=None, rms_eps=1e-5):
  n, h = x.shape
  inter = wg.shape[1]
  tm = min(_TM, _round_up(n, 8))
  mp = _round_up(n, tm)
  ti = inter if inter <= _TI else _TI
  ip = _round_up(inter, ti)
  xp = _pad_axis(x, mp, 0)
  wgp = _pad_axis(wg, ip, 1)
  wup = _pad_axis(wu, ip, 1)
  wdp = _pad_axis(wd, ip, 0)
  in_specs = [
      pl.BlockSpec((tm, h), lambda m, j: (m, 0)),
      pl.BlockSpec((h, ti), lambda m, j: (0, j)),
      pl.BlockSpec((h, ti), lambda m, j: (0, j)),
      pl.BlockSpec((ti, h), lambda m, j: (j, 0)),
  ]
  args = [xp, wgp, wup, wdp]
  if rms_weight is not None:
    in_specs.append(pl.BlockSpec((1, h), lambda m, j: (0, 0)))
    args.append(rms_weight.reshape(1, h))
  res_mode = 0
  if residual_is_x:
    res_mode = 2
  elif residual is not None:
    res_mode = 1
    in_specs.append(pl.BlockSpec((tm, h), lambda m, j: (m, 0)))
    args.append(_pad_axis(residual, mp, 0))
  out = pl.pallas_call(
      _make_mlp_kernel(rms_weight is not None, res_mode, rms_eps),
      out_shape=jax.ShapeDtypeStruct((mp, h), x.dtype),
      grid=(mp // tm, ip // ti),
      in_specs=in_specs,
      out_specs=pl.BlockSpec((tm, h), lambda m, j: (m, 0)),
      scratch_shapes=[pltpu.VMEM((tm, h), jnp.float32)],
      compiler_params=_cp("parallel", "arbitrary"),
  )(*args)
  return out[:n]


# --------------------------------------------------------------------------------------
# MoE experts: dense-per-expert compute (matches reference forward semantics) with f32
# accumulation, tiled over (M, expert, intermediate). Accumulator seeded with the
# shared-expert + residual output so no extra HBM add pass is needed. Routing score
# extraction is hoisted out of the intermediate-tile loop into a VMEM scratch.
# --------------------------------------------------------------------------------------
# TODO(synk): token-routed experts (sort/bucket tokens, scalar-prefetch gather via
# PrefetchScalarGridSpec) would cut expert FLOPs by E/top_k; kept dense to match the
# reference `forward` exactly.
def _moe_kernel(x_ref, s_ref, wg_ref, wu_ref, wd_ref, base_ref, o_ref,
                acc_ref, scol_ref):
  ei = pl.program_id(1)
  ii = pl.program_id(2)

  @pl.when((ei == 0) & (ii == 0))
  def _():
    acc_ref[...] = base_ref[...].astype(jnp.float32)

  @pl.when(ii == 0)
  def _():
    scores = s_ref[...].astype(jnp.float32)
    sel = lax.broadcasted_iota(jnp.int32, scores.shape, 1) == ei
    scol_ref[...] = jnp.sum(jnp.where(sel, scores, 0.0), axis=-1, keepdims=True)

  x = x_ref[...]
  s_col = scol_ref[...]
  gate = jnp.dot(x, wg_ref[...], preferred_element_type=jnp.float32) * s_col
  up = jnp.dot(x, wu_ref[...], preferred_element_type=jnp.float32) * s_col
  act = (jax.nn.silu(gate) * up).astype(x_ref.dtype)
  acc_ref[...] += jnp.dot(act, wd_ref[...], preferred_element_type=jnp.float32)

  @pl.when((ei == pl.num_programs(1) - 1) & (ii == pl.num_programs(2) - 1))
  def _():
    o_ref[...] = acc_ref[...].astype(o_ref.dtype)


def pallas_moe_experts(x, scores, wg, wu, wd, base):
  # x: (N, H); scores: (N, E); wg/wu: (E, H, I); wd: (E, I, H); base: (N, H)
  n, h = x.shape
  e, _, inter = wg.shape
  tm = min(_TM, _round_up(n, 8))
  mp = _round_up(n, tm)
  ti = inter if inter <= _TI else _TI
  ip = _round_up(inter, ti)
  xp = _pad_axis(x, mp, 0)
  sp_ = _pad_axis(scores, mp, 0)
  bp = _pad_axis(base, mp, 0)
  wgp = _pad_axis(wg, ip, 2)
  wup = _pad_axis(wu, ip, 2)
  wdp = _pad_axis(wd, ip, 1)
  out = pl.pallas_call(
      _moe_kernel,
      out_shape=jax.ShapeDtypeStruct((mp, h), x.dtype),
      grid=(mp // tm, e, ip // ti),
      in_specs=[
          pl.BlockSpec((tm, h), lambda m, ei, ii: (m, 0)),
          pl.BlockSpec((tm, e), lambda m, ei, ii: (m, 0)),
          pl.BlockSpec((None, h, ti), lambda m, ei, ii: (ei, 0, ii)),
          pl.BlockSpec((None, h, ti), lambda m, ei, ii: (ei, 0, ii)),
          pl.BlockSpec((None, ti, h), lambda m, ei, ii: (ei, ii, 0)),
          pl.BlockSpec((tm, h), lambda m, ei, ii: (m, 0)),
      ],
      out_specs=pl.BlockSpec((tm, h), lambda m, ei, ii: (m, 0)),
      scratch_shapes=[pltpu.VMEM((tm, h), jnp.float32),
                      pltpu.VMEM((tm, 1), jnp.float32)],
      compiler_params=_cp("parallel", "arbitrary", "arbitrary"),
  )(xp, sp_, wgp, wup, wdp, bp)
  return out[:n]


# --------------------------------------------------------------------------------------
# Flash attention with fused GQA head packing and in-kernel causal masking.
# grid = (B, KV_heads, q_tiles, kv_tiles); online softmax in VMEM scratch.
# All query heads of a KV group are folded into one (g*tq, d) MXU op.
# --------------------------------------------------------------------------------------
def _flash_attn_kernel(q_ref, k_ref, v_ref, o_ref, m_ref, l_ref, acc_ref,
                       *, scaling, tq, tkv, num_groups, seq_len):
  qi = pl.program_id(2)
  ki = pl.program_id(3)
  g = num_groups

  @pl.when(ki == 0)
  def _init():
    m_ref[...] = jnp.full(m_ref.shape, -jnp.inf, m_ref.dtype)
    l_ref[...] = jnp.zeros_like(l_ref)
    acc_ref[...] = jnp.zeros_like(acc_ref)

  # Skip kv blocks that lie entirely above the causal diagonal for this q tile.
  @pl.when(ki * tkv <= qi * tq + (tq - 1))
  def _compute():
    d = q_ref.shape[-1]
    q = q_ref[...].reshape(g * tq, d)                 # fuse GQA groups: one big MXU op
    kk = k_ref[...]                                   # (tkv, d)
    vv = v_ref[...]                                   # (tkv, d)
    s = lax.dot_general(q, kk, (((1,), (1,)), ((), ())),
                        preferred_element_type=jnp.float32) * scaling
    rows = lax.broadcasted_iota(jnp.int32, (g * tq, tkv), 0) % tq
    cols = lax.broadcasted_iota(jnp.int32, (g * tq, tkv), 1)
    qpos = qi * tq + rows
    kpos = ki * tkv + cols
    mask = (kpos <= qpos) & (kpos < seq_len)          # causal + kv padding mask
    s = jnp.where(mask, s, -1e30)
    m_prev = m_ref[...]
    m_new = jnp.maximum(m_prev, jnp.max(s, axis=-1, keepdims=True))
    alpha = jnp.exp(m_prev - m_new)
    p = jnp.where(mask, jnp.exp(s - m_new), 0.0)
    l_ref[...] = alpha * l_ref[...] + jnp.sum(p, axis=-1, keepdims=True)
    acc_ref[...] = alpha * acc_ref[...] + lax.dot_general(
        p.astype(vv.dtype), vv, (((1,), (0,)), ((), ())),
        preferred_element_type=jnp.float32)
    m_ref[...] = m_new

  @pl.when(ki == pl.num_programs(3) - 1)
  def _finalize():
    d = o_ref.shape[-1]
    inv_l = pl.reciprocal(l_ref[...], approx=True)
    o_ref[...] = (acc_ref[...] * inv_l).reshape(g, tq, d).astype(o_ref.dtype)


def pallas_flash_attention(q, k, v, scaling):
  # q: (B, NH, S, D); k/v: (B, KVH, S, D)
  b, nh, s, d = q.shape
  kvh = k.shape[1]
  g = nh // kvh
  t = min(_TSEQ, _round_up(s, 8))
  sp = _round_up(s, t)
  q5 = _pad_axis(q.reshape(b, kvh, g, s, d), sp, 3)
  kp = _pad_axis(k, sp, 2)
  vp = _pad_axis(v, sp, 2)
  kernel = functools.partial(_flash_attn_kernel, scaling=scaling, tq=t, tkv=t,
                             num_groups=g, seq_len=s)
  out = pl.pallas_call(
      kernel,
      out_shape=jax.ShapeDtypeStruct((b, kvh, g, sp, d), q.dtype),
      grid=(b, kvh, sp // t, sp // t),
      in_specs=[
          pl.BlockSpec((None, None, g, t, d),
                       lambda bi, hi, qi, ki: (bi, hi, 0, qi, 0)),
          # above-diagonal (skipped) kv blocks are clamped to the diagonal block
          # so the pipeline dedups their DMA (tq == tkv -> diagonal index == qi).
          pl.BlockSpec((None, None, t, d),
                       lambda bi, hi, qi, ki: (bi, hi, jnp.minimum(ki, qi), 0)),
          pl.BlockSpec((None, None, t, d),
                       lambda bi, hi, qi, ki: (bi, hi, jnp.minimum(ki, qi), 0)),
      ],
      out_specs=pl.BlockSpec((None, None, g, t, d),
                             lambda bi, hi, qi, ki: (bi, hi, 0, qi, 0)),
      scratch_shapes=[
          pltpu.VMEM((g * t, 1), jnp.float32),
          pltpu.VMEM((g * t, 1), jnp.float32),
          pltpu.VMEM((g * t, d), jnp.float32),
      ],
      compiler_params=_cp("parallel", "parallel", "parallel", "arbitrary"),
  )(q5, kp, vp)
  return out[:, :, :, :s, :].reshape(b, nh, s, d)


# --------------------------------------------------------------------------------------
# JAX glue (matches the torch reference semantics)
# --------------------------------------------------------------------------------------
def rotary_embedding(seq_len, head_dim, theta, dtype):
  inv_freq = 1.0 / (theta ** (jnp.arange(0, head_dim, 2, dtype=jnp.float32) / head_dim))
  pos = jnp.arange(seq_len, dtype=jnp.float32)
  freqs = pos[:, None] * inv_freq[None, :]                       # (S, D/2)
  return jnp.cos(freqs)[None].astype(dtype), jnp.sin(freqs)[None].astype(dtype)


def apply_rotary_emb_half(q, k, cos, sin):
  # q/k projection columns are pre-permuted per head to [even..., odd...] at init,
  # so RoPE is the contiguous rotate-half form (no lane-interleave relayouts).
  half = q.shape[-1] // 2
  cos = cos[:, :, None, :]                                       # (1, S, 1, D/2)
  sin = sin[:, :, None, :]

  def rot(x):
    x1 = x[..., :half]
    x2 = x[..., half:]
    return jnp.concatenate([x1 * cos - x2 * sin, x2 * cos + x1 * sin], axis=-1)

  return rot(q).astype(q.dtype), rot(k).astype(k.dtype)


def attention_layer(p, h_flat, cos, sin, cfg, use_rope, b, s):
  hid = h_flat.shape[-1]
  nh, kvh, d = cfg["num_attention_heads"], cfg["num_key_value_heads"], cfg["head_dim"]
  eps = cfg["rms_norm_eps"]
  # input RMSNorm fused into the fused q/k/v projection (x streamed from HBM once)
  qkv = pallas_matmul(h_flat, p["qkv_proj"], rms_weight=p["input_ln"], rms_eps=eps)
  nq, nk = nh * d, kvh * d
  q = qkv[:, :nq].reshape(b, s, nh, d)
  k = qkv[:, nq:nq + nk].reshape(b, s, kvh, d)
  v = qkv[:, nq + nk:].reshape(b, s, kvh, d)
  if use_rope:
    q, k = apply_rotary_emb_half(q, k, cos, sin)
    if cfg["use_qk_norm"]:
      q = pallas_l2norm(q, eps)
      k = pallas_l2norm(k, eps)
  if cfg["attn_temperature_tuning"] and not use_rope:
    pos = jnp.arange(s, dtype=jnp.float32)
    attn_scales = (
        jnp.log(jnp.floor((pos + 1.0) / cfg["floor_scale"]) + 1.0) * cfg["attn_scale"]
        + 1.0
    )
    q = (q * attn_scales.reshape(1, s, 1, 1)).astype(q.dtype)
  # TODO(synk): these transposes are HBM relayouts; a head-major qkv out_spec would
  # remove them but needs per-head output tiling of the projection.
  q = q.transpose(0, 2, 1, 3)   # (B, NH, S, D)
  k = k.transpose(0, 2, 1, 3)   # (B, KVH, S, D)
  v = v.transpose(0, 2, 1, 3)   # (B, KVH, S, D)
  attn = pallas_flash_attention(q, k, v, cfg["head_dim"] ** -0.5)
  attn = attn.transpose(0, 2, 1, 3).reshape(b * s, hid)
  # o_proj with the pre-attention residual fused into the epilogue
  return pallas_matmul(attn, p["o_proj"], residual=h_flat)


def moe_layer(p, hn, residual_flat, cfg):
  # TODO(synk): top-k routing / scatter stays in plain JAX glue.
  router_logits = pallas_matmul(hn, p["router"])                 # (N, E)
  e = cfg["num_local_experts"]
  logits_f32 = router_logits.astype(jnp.float32)
  _, top_idx = jax.lax.top_k(logits_f32, cfg["num_experts_per_tok"])
  selected = jnp.sum(jax.nn.one_hot(top_idx, e, dtype=jnp.float32), axis=1) > 0
  sparse = jnp.where(selected, logits_f32, -jnp.inf)
  scores = jax.nn.sigmoid(sparse).astype(hn.dtype)               # (N, E)
  # shared expert with the post-attention residual fused in
  base = pallas_mlp(hn, p["shared_gate"], p["shared_up"], p["shared_down"],
                    residual=residual_flat)
  return pallas_moe_experts(hn, scores, p["expert_gate"], p["expert_up"],
                            p["expert_down"], base)


def decoder_layer(p, h, cos, sin, cfg, layer_idx):
  no_rope = cfg["no_rope_layers"]
  use_rope = bool(no_rope and layer_idx < len(no_rope) and no_rope[layer_idx])
  b, s, hid = h.shape
  flat = h.reshape(b * s, hid)
  # attention_layer includes the fused input RMSNorm and the residual add
  h_flat = attention_layer(p, flat, cos, sin, cfg, use_rope, b, s)   # (B*S, H)
  if layer_idx in cfg["moe_layers"]:
    hn = pallas_rmsnorm(h_flat, p["post_ln"], cfg["rms_norm_eps"])
    out = moe_layer(p, hn, h_flat, cfg)
  else:
    # post-attention RMSNorm fused into the MLP; residual = pre-norm input (== x)
    out = pallas_mlp(h_flat, p["gate_proj"], p["up_proj"], p["down_proj"],
                     residual_is_x=True, rms_weight=p["post_ln"],
                     rms_eps=cfg["rms_norm_eps"])
  return out.reshape(b, s, hid)


def llama4_text_model(params, input_ids, cfg):
  b, s = input_ids.shape
  h = params["embed"][input_ids]                                 # embedding gather (glue)
  cos, sin = rotary_embedding(s, cfg["head_dim"], cfg["rope_theta"], h.dtype)
  for i, lp in enumerate(params["layers"]):
    h = decoder_layer(lp, h, cos, sin, cfg, i)
  return pallas_rmsnorm(h, params["final_norm"], cfg["rms_norm_eps"])


# --------------------------------------------------------------------------------------
# Deterministic parameter init (bf16; q/k/v fused; q/k columns RoPE-permuted at init;
# MoE gate_up split into gate / up once so nothing is sliced per call)
# --------------------------------------------------------------------------------------
def _rope_head_permute(w, n_heads, head_dim):
  # Per-head column reorder [0,2,4,...,1,3,...]: attention scores are invariant to a
  # shared q/k head-dim permutation; enables contiguous rotate-half RoPE.
  perm = jnp.concatenate([jnp.arange(0, head_dim, 2), jnp.arange(1, head_dim, 2)])
  w = w.reshape(w.shape[0], n_heads, head_dim)[:, :, perm]
  return w.reshape(w.shape[0], n_heads * head_dim)


def init_params(key, cfg, dtype=jnp.bfloat16):
  keys = iter(jax.random.split(key, 256))

  def w(shape, scale=0.02):
    return (jax.random.normal(next(keys), shape, dtype=jnp.float32) * scale).astype(dtype)

  H = cfg["hidden_size"]
  D = cfg["head_dim"]
  NH = cfg["num_attention_heads"]
  KVH = cfg["num_key_value_heads"]
  I = cfg["intermediate_size"]
  Imlp = cfg["intermediate_size_mlp"]
  E = cfg["num_local_experts"]

  layers = []
  for layer_idx in range(cfg["num_hidden_layers"]):
    wq = _rope_head_permute(w((H, NH * D)), NH, D)
    wk = _rope_head_permute(w((H, KVH * D)), KVH, D)
    wv = w((H, KVH * D))
    lp = {
        "input_ln": jnp.ones((H,), dtype),
        "post_ln": jnp.ones((H,), dtype),
        "qkv_proj": jnp.concatenate([wq, wk, wv], axis=1),
        "o_proj": w((H, H)),
    }
    if layer_idx in cfg["moe_layers"]:
      lp.update({
          "router": w((H, E)),
          "expert_gate": w((E, H, I)),     # == gate_up_proj[..., :I]
          "expert_up": w((E, H, I)),       # == gate_up_proj[..., I:]
          "expert_down": w((E, I, H)),
          "shared_gate": w((H, I)),
          "shared_up": w((H, I)),
          "shared_down": w((I, H)),
      })
    else:
      lp.update({
          "gate_proj": w((H, Imlp)),
          "up_proj": w((H, Imlp)),
          "down_proj": w((Imlp, H)),
      })
    layers.append(lp)

  return {
      "embed": w((cfg["vocab_size"], H), scale=1.0),
      "layers": layers,
      "final_norm": jnp.ones((H,), dtype),
  }


# --------------------------------------------------------------------------------------
# Main
# --------------------------------------------------------------------------------------
if __name__ == "__main__":
  cfg = dict(
      vocab_size=64,
      hidden_size=64,
      head_dim=16,
      num_attention_heads=4,
      num_key_value_heads=2,
      intermediate_size=64,         # MoE experts & shared expert
      intermediate_size_mlp=128,    # dense-MLP layers
      num_local_experts=4,
      num_experts_per_tok=2,
      num_hidden_layers=2,
      moe_layers=(1,),
      no_rope_layers=(1, 0),        # layer 0 uses RoPE (+ qk_norm), layer 1 uses temp tuning
      rms_norm_eps=1e-5,
      rope_theta=10000.0,
      attn_temperature_tuning=True,
      floor_scale=4.0,
      attn_scale=0.1,
      use_qk_norm=True,
      attention_bias=False,
      attention_dropout=0.0,
      max_position_embeddings=128,
      hidden_act="silu",
  )

  key = jax.random.PRNGKey(0)
  pkey, ikey = jax.random.split(key)
  params = init_params(pkey, cfg)

  batch, seq = 2, 8
  input_ids = jax.random.randint(ikey, (batch, seq), 0, cfg["vocab_size"], dtype=jnp.int32)

  fwd = jax.jit(lambda p, x: llama4_text_model(p, x, cfg))
  out = fwd(params, input_ids)
  out = jax.block_until_ready(out)

  assert out.shape == (batch, seq, cfg["hidden_size"])
  assert bool(jnp.isfinite(out.astype(jnp.float32)).all())
  print("KERNEL_OK")
</pallas_src>

<mosaic_0001>
module attributes {stable_mosaic.version = 11 : i64} {
  func.func @kernel(%arg0: i32, %arg1: i32, %arg2: memref<16x64xbf16, #tpu.memory_space<vmem>>, %arg3: memref<64x128xbf16, #tpu.memory_space<vmem>>, %arg4: memref<1x64xbf16, #tpu.memory_space<vmem>>, %arg5: memref<16x128xbf16, #tpu.memory_space<vmem>>) attributes {dimension_semantics = [#tpu.dimension_semantics<parallel>, #tpu.dimension_semantics<parallel>], iteration_bounds = array<i64: 1, 1>, scalar_prefetch = 0 : i64, scratch_operands = 0 : i64, tpu.core_type = #tpu.core_type<tc>, window_params = [{transform_indices = @transform_0, window_bounds = array<i64: 16, 64>}, {transform_indices = @transform_1, window_bounds = array<i64: 64, 128>}, {pipeline_mode = #tpu.pipeline_mode<synchronous>, transform_indices = @transform_2, window_bounds = array<i64: 1, 64>}, {transform_indices = @transform_3, window_bounds = array<i64: 16, 128>}]} {
    %c0 = arith.constant 0 : index
    %c0_0 = arith.constant 0 : index
    %0 = vector.load %arg2[%c0, %c0_0] : memref<16x64xbf16, #tpu.memory_space<vmem>>, vector<16x64xbf16>
    %1 = arith.extf %0 : vector<16x64xbf16> to vector<16x64xf32>
    %2 = arith.mulf %1, %1 : vector<16x64xf32>
    %cst = arith.constant dense<0.000000e+00> : vector<16xf32>
    %3 = vector.multi_reduction <add>, %2, %cst [1] : vector<16x64xf32> to vector<16xf32>
    %4 = vector.shape_cast %3 : vector<16xf32> to vector<16x1xf32>
    %cst_1 = arith.constant 6.400000e+01 : f32
    %5 = vector.broadcast %cst_1 : f32 to vector<16x1xf32>
    %6 = arith.divf %4, %5 : vector<16x1xf32>
    %cst_2 = arith.constant 9.99999974E-6 : f32
    %7 = vector.broadcast %cst_2 : f32 to vector<16x1xf32>
    %8 = arith.addf %6, %7 : vector<16x1xf32>
    %9 = math.rsqrt %8 : vector<16x1xf32>
    %10 = vector.broadcast %9 : vector<16x1xf32> to vector<16x64xf32>
    %11 = arith.mulf %1, %10 : vector<16x64xf32>
    %12 = arith.truncf %11 : vector<16x64xf32> to vector<16x64xbf16>
    %c0_3 = arith.constant 0 : index
    %c0_4 = arith.constant 0 : index
    %13 = vector.load %arg4[%c0_3, %c0_4] : memref<1x64xbf16, #tpu.memory_space<vmem>>, vector<1x64xbf16>
    %14 = vector.broadcast %13 : vector<1x64xbf16> to vector<16x64xbf16>
    %15 = arith.mulf %12, %14 : vector<16x64xbf16>
    %c0_5 = arith.constant 0 : index
    %c0_6 = arith.constant 0 : index
    %16 = vector.load %arg3[%c0_5, %c0_6] : memref<64x128xbf16, #tpu.memory_space<vmem>>, vector<64x128xbf16>
    %cst_7 = arith.constant dense<0.000000e+00> : vector<16x128xf32>
    %17 = tpu.matmul %15, %16, %cst_7 {dimension_numbers = #tpu.dot_dimension_numbers<[1], [0], [0], [1], [0, 0, 1, 1], [], []>} : vector<16x64xbf16>, vector<64x128xbf16>, vector<16x128xf32> -> vector<16x128xf32>
    %18 = arith.truncf %17 : vector<16x128xf32> to vector<16x128xbf16>
    %c0_8 = arith.constant 0 : index
    %c0_9 = arith.constant 0 : index
    %19 = vector.load %arg5[%c0_8, %c0_9] : memref<16x128xbf16, #tpu.memory_space<vmem>>, vector<16x128xbf16>
    tpu.vector_store %arg5[%c0_8, %c0_9], %18 {strides = array<i32>} : memref<16x128xbf16, #tpu.memory_space<vmem>>, vector<16x128xbf16>,
    return
  }
  func.func @transform_0(%arg0: i32, %arg1: i32) -> (i32, i32) {
    %c0_i32 = arith.constant 0 : i32
    %c0_i32_0 = arith.constant 0 : i32
    return %arg0, %c0_i32 : i32, i32
  }
  func.func @transform_1(%arg0: i32, %arg1: i32) -> (i32, i32) {
    %c0_i32 = arith.constant 0 : i32
    %c0_i32_0 = arith.constant 0 : i32
    return %c0_i32, %arg1 : i32, i32
  }
  func.func @transform_2(%arg0: i32, %arg1: i32) -> (i32, i32) {
    %c0_i32 = arith.constant 0 : i32
    %c0_i32_0 = arith.constant 0 : i32
    %c0_i32_1 = arith.constant 0 : i32
    return %c0_i32, %c0_i32_0 : i32, i32
  }
  func.func @transform_3(%arg0: i32, %arg1: i32) -> (i32, i32) {
    %c0_i32 = arith.constant 0 : i32
    return %arg0, %arg1 : i32, i32
  }
}

module attributes {stable_mosaic.version = 11 : i64} {
  func.func @_l2norm_kernel(%arg0: i32, %arg1: memref<64x16xbf16, #tpu.memory_space<vmem>>, %arg2: memref<64x16xbf16, #tpu.memory_space<vmem>>) attributes {dimension_semantics = [#tpu.dimension_semantics<parallel>], iteration_bounds = array<i64: 1>, scalar_prefetch = 0 : i64, scratch_operands = 0 : i64, tpu.core_type = #tpu.core_type<tc>, window_params = [{transform_indices = @transform_0, window_bounds = array<i64: 64, 16>}, {transform_indices = @transform_1, window_bounds = array<i64: 64, 16>}]} {
    %c0 = arith.constant 0 : index
    %c0_0 = arith.constant 0 : index
    %0 = vector.load %arg1[%c0, %c0_0] : memref<64x16xbf16, #tpu.memory_space<vmem>>, vector<64x16xbf16>
    %1 = arith.extf %0 : vector<64x16xbf16> to vector<64x16xf32>
    %2 = arith.mulf %1, %1 : vector<64x16xf32>
    %cst = arith.constant dense<0.000000e+00> : vector<64xf32>
    %3 = vector.multi_reduction <add>, %2, %cst [1] : vector<64x16xf32> to vector<64xf32>
    %4 = vector.shape_cast %3 : vector<64xf32> to vector<64x1xf32>
    %cst_1 = arith.constant 1.600000e+01 : f32
    %5 = vector.broadcast %cst_1 : f32 to vector<64x1xf32>
    %6 = arith.divf %4, %5 : vector<64x1xf32>
    %cst_2 = arith.constant 9.99999974E-6 : f32
    %7 = vector.broadcast %cst_2 : f32 to vector<64x1xf32>
    %8 = arith.addf %6, %7 : vector<64x1xf32>
    %9 = math.rsqrt %8 : vector<64x1xf32>
    %10 = vector.broadcast %9 : vector<64x1xf32> to vector<64x16xf32>
    %11 = arith.mulf %1, %10 : vector<64x16xf32>
    %12 = arith.truncf %11 : vector<64x16xf32> to vector<64x16xbf16>
    %c0_3 = arith.constant 0 : index
    %c0_4 = arith.constant 0 : index
    %13 = vector.load %arg2[%c0_3, %c0_4] : memref<64x16xbf16, #tpu.memory_space<vmem>>, vector<64x16xbf16>
    tpu.vector_store %arg2[%c0_3, %c0_4], %12 {strides = array<i32>} : memref<64x16xbf16, #tpu.memory_space<vmem>>, vector<64x16xbf16>,
    return
  }
  func.func @transform_0(%arg0: i32) -> (i32, i32) {
    %c0_i32 = arith.constant 0 : i32
    %c0_i32_0 = arith.constant 0 : i32
    return %arg0, %c0_i32 : i32, i32
  }
  func.func @transform_1(%arg0: i32) -> (i32, i32) {
    %c0_i32 = arith.constant 0 : i32
    %c0_i32_0 = arith.constant 0 : i32
    return %arg0, %c0_i32 : i32, i32
  }
}

module attributes {stable_mosaic.version = 11 : i64} {
  func.func @_l2norm_kernel(%arg0: i32, %arg1: memref<32x16xbf16, #tpu.memory_space<vmem>>, %arg2: memref<32x16xbf16, #tpu.memory_space<vmem>>) attributes {dimension_semantics = [#tpu.dimension_semantics<parallel>], iteration_bounds = array<i64: 1>, scalar_prefetch = 0 : i64, scratch_operands = 0 : i64, tpu.core_type = #tpu.core_type<tc>, window_params = [{transform_indices = @transform_0, window_bounds = array<i64: 32, 16>}, {transform_indices = @transform_1, window_bounds = array<i64: 32, 16>}]} {
    %c0 = arith.constant 0 : index
    %c0_0 = arith.constant 0 : index
    %0 = vector.load %arg1[%c0, %c0_0] : memref<32x16xbf16, #tpu.memory_space<vmem>>, vector<32x16xbf16>
    %1 = arith.extf %0 : vector<32x16xbf16> to vector<32x16xf32>
    %2 = arith.mulf %1, %1 : vector<32x16xf32>
    %cst = arith.constant dense<0.000000e+00> : vector<32xf32>
    %3 = vector.multi_reduction <add>, %2, %cst [1] : vector<32x16xf32> to vector<32xf32>
    %4 = vector.shape_cast %3 : vector<32xf32> to vector<32x1xf32>
    %cst_1 = arith.constant 1.600000e+01 : f32
    %5 = vector.broadcast %cst_1 : f32 to vector<32x1xf32>
    %6 = arith.divf %4, %5 : vector<32x1xf32>
    %cst_2 = arith.constant 9.99999974E-6 : f32
    %7 = vector.broadcast %cst_2 : f32 to vector<32x1xf32>
    %8 = arith.addf %6, %7 : vector<32x1xf32>
    %9 = math.rsqrt %8 : vector<32x1xf32>
    %10 = vector.broadcast %9 : vector<32x1xf32> to vector<32x16xf32>
    %11 = arith.mulf %1, %10 : vector<32x16xf32>
    %12 = arith.truncf %11 : vector<32x16xf32> to vector<32x16xbf16>
    %c0_3 = arith.constant 0 : index
    %c0_4 = arith.constant 0 : index
    %13 = vector.load %arg2[%c0_3, %c0_4] : memref<32x16xbf16, #tpu.memory_space<vmem>>, vector<32x16xbf16>
    tpu.vector_store %arg2[%c0_3, %c0_4], %12 {strides = array<i32>} : memref<32x16xbf16, #tpu.memory_space<vmem>>, vector<32x16xbf16>,
    return
  }
  func.func @transform_0(%arg0: i32) -> (i32, i32) {
    %c0_i32 = arith.constant 0 : i32
    %c0_i32_0 = arith.constant 0 : i32
    return %arg0, %c0_i32 : i32, i32
  }
  func.func @transform_1(%arg0: i32) -> (i32, i32) {
    %c0_i32 = arith.constant 0 : i32
    %c0_i32_0 = arith.constant 0 : i32
    return %arg0, %c0_i32 : i32, i32
  }
}

module attributes {stable_mosaic.version = 11 : i64} {
  func.func @_flash_attn_kernel(%arg0: i32, %arg1: i32, %arg2: i32, %arg3: i32, %arg4: memref<1x1x2x8x16xbf16, #tpu.memory_space<vmem>>, %arg5: memref<1x1x8x16xbf16, #tpu.memory_space<vmem>>, %arg6: memref<1x1x8x16xbf16, #tpu.memory_space<vmem>>, %arg7: memref<1x1x2x8x16xbf16, #tpu.memory_space<vmem>>, %arg8: memref<16x1xf32, #tpu.memory_space<vmem>>, %arg9: memref<16x1xf32, #tpu.memory_space<vmem>>, %arg10: memref<16x16xf32, #tpu.memory_space<vmem>>) attributes {dimension_semantics = [#tpu.dimension_semantics<parallel>, #tpu.dimension_semantics<parallel>, #tpu.dimension_semantics<parallel>, #tpu.dimension_semantics<arbitrary>], iteration_bounds = array<i64: 2, 2, 1, 1>, scalar_prefetch = 0 : i64, scratch_operands = 3 : i64, tpu.core_type = #tpu.core_type<tc>, window_params = [{transform_indices = @transform_0, window_bounds = array<i64: 1, 1, 2, 8, 16>}, {transform_indices = @transform_1, window_bounds = array<i64: 1, 1, 8, 16>}, {transform_indices = @transform_2, window_bounds = array<i64: 1, 1, 8, 16>}, {transform_indices = @transform_3, window_bounds = array<i64: 1, 1, 2, 8, 16>}]} {
    %c0_i32 = arith.constant 0 : i32
    %0 = arith.cmpi eq, %arg3, %c0_i32 : i32
    %1 = arith.extui %0 : i1 to i32
    %c0_i32_0 = arith.constant 0 : i32
    %2 = arith.cmpi ne, %1, %c0_i32_0 : i32
    scf.if %2 {
      %cst = arith.constant 0xFF800000 : f32
      %12 = vector.broadcast %cst : f32 to vector<16x1xf32>
      %c0 = arith.constant 0 : index
      %c0_5 = arith.constant 0 : index
      %13 = vector.load %arg8[%c0, %c0_5] : memref<16x1xf32, #tpu.memory_space<vmem>>, vector<16x1xf32>
      tpu.vector_store %arg8[%c0, %c0_5], %12 {strides = array<i32>} : memref<16x1xf32, #tpu.memory_space<vmem>>, vector<16x1xf32>,
      %cst_6 = arith.constant 0.000000e+00 : f32
      %14 = vector.broadcast %cst_6 : f32 to vector<16x1xf32>
      %c0_7 = arith.constant 0 : index
      %c0_8 = arith.constant 0 : index
      %15 = vector.load %arg9[%c0_7, %c0_8] : memref<16x1xf32, #tpu.memory_space<vmem>>, vector<16x1xf32>
      tpu.vector_store %arg9[%c0_7, %c0_8], %14 {strides = array<i32>} : memref<16x1xf32, #tpu.memory_space<vmem>>, vector<16x1xf32>,
      %cst_9 = arith.constant 0.000000e+00 : f32
      %16 = vector.broadcast %cst_9 : f32 to vector<16x16xf32>
      %c0_10 = arith.constant 0 : index
      %c0_11 = arith.constant 0 : index
      %17 = vector.load %arg10[%c0_10, %c0_11] : memref<16x16xf32, #tpu.memory_space<vmem>>, vector<16x16xf32>
      tpu.vector_store %arg10[%c0_10, %c0_11], %16 {strides = array<i32>} : memref<16x16xf32, #tpu.memory_space<vmem>>, vector<16x16xf32>,
    } else {
    }
    %c8_i32 = arith.constant 8 : i32
    %3 = arith.muli %arg3, %c8_i32 : i32
    %c8_i32_1 = arith.constant 8 : i32
    %4 = arith.muli %arg2, %c8_i32_1 : i32
    %c7_i32 = arith.constant 7 : i32
    %5 = arith.addi %4, %c7_i32 : i32
    %6 = arith.cmpi sle, %3, %5 : i32
    %7 = arith.extui %6 : i1 to i32
    %c0_i32_2 = arith.constant 0 : i32
    %8 = arith.cmpi ne, %7, %c0_i32_2 : i32
    scf.if %8 {
      %c0 = arith.constant 0 : index
      %c0_5 = arith.constant 0 : index
      %c0_6 = arith.constant 0 : index
      %c0_7 = arith.constant 0 : index
      %c0_8 = arith.constant 0 : index
      %12 = vector.load %arg4[%c0, %c0_5, %c0_6, %c0_7, %c0_8] : memref<1x1x2x8x16xbf16, #tpu.memory_space<vmem>>, vector<1x1x2x8x16xbf16>
      %13 = vector.shape_cast %12 : vector<1x1x2x8x16xbf16> to vector<2x8x16xbf16>
      %14 = vector.shape_cast %13 : vector<2x8x16xbf16> to vector<16x16xbf16>
      %c0_9 = arith.constant 0 : index
      %c0_10 = arith.constant 0 : index
      %c0_11 = arith.constant 0 : index
      %c0_12 = arith.constant 0 : index
      %15 = vector.load %arg5[%c0_9, %c0_10, %c0_11, %c0_12] : memref<1x1x8x16xbf16, #tpu.memory_space<vmem>>, vector<1x1x8x16xbf16>
      %16 = vector.shape_cast %15 : vector<1x1x8x16xbf16> to vector<8x16xbf16>
      %c0_13 = arith.constant 0 : index
      %c0_14 = arith.constant 0 : index
      %c0_15 = arith.constant 0 : index
      %c0_16 = arith.constant 0 : index
      %17 = vector.load %arg6[%c0_13, %c0_14, %c0_15, %c0_16] : memref<1x1x8x16xbf16, #tpu.memory_space<vmem>>, vector<1x1x8x16xbf16>
      %18 = vector.shape_cast %17 : vector<1x1x8x16xbf16> to vector<8x16xbf16>
      %cst = arith.constant dense<0.000000e+00> : vector<16x8xf32>
      %19 = tpu.matmul %14, %16, %cst {dimension_numbers = #tpu.dot_dimension_numbers<[1], [1], [0], [0], [0, 0, 1, 0], [], []>} : vector<16x16xbf16>, vector<8x16xbf16>, vector<16x8xf32> -> vector<16x8xf32>
      %cst_17 = arith.constant 2.500000e-01 : f32
      %20 = vector.broadcast %cst_17 : f32 to vector<16x8xf32>
      %21 = arith.mulf %19, %20 : vector<16x8xf32>
      %22 = tpu.iota {dimensions = array<i32: 0>} : vector<16x8xi32>
      %c8_i32_18 = arith.constant 8 : i32
      %c0_i32_19 = arith.constant 0 : i32
      %23 = arith.cmpi eq, %c8_i32_18, %c0_i32_19 : i32
      %c1_i32 = arith.constant 1 : i32
      %24 = arith.select %23, %c1_i32, %c8_i32_18 : i32
      %25 = vector.broadcast %24 : i32 to vector<16x8xi32>
      %26 = arith.remsi %22, %25 : vector<16x8xi32>
      %c0_i32_20 = arith.constant 0 : i32
      %27 = vector.broadcast %c0_i32_20 : i32 to vector<16x8xi32>
      %28 = arith.cmpi ne, %26, %27 : vector<16x8xi32>
      %c0_i32_21 = arith.constant 0 : i32
      %29 = vector.broadcast %c0_i32_21 : i32 to vector<16x8xi32>
      %30 = arith.cmpi slt, %26, %29 : vector<16x8xi32>
      %c0_i32_22 = arith.constant 0 : i32
      %31 = arith.cmpi slt, %24, %c0_i32_22 : i32
      %32 = vector.broadcast %31 : i1 to vector<16x8xi1>
      %33 = vector.broadcast %32 : vector<16x8xi1> to vector<16x8xi1>
      %34 = arith.xori %30, %33 : vector<16x8xi1>
      %35 = arith.andi %34, %28 : vector<16x8xi1>
      %36 = vector.broadcast %24 : i32 to vector<16x8xi32>
      %37 = arith.addi %26, %36 : vector<16x8xi32>
      %38 = arith.select %35, %37, %26 : vector<16x8xi1>, vector<16x8xi32>
      %39 = tpu.iota {dimensions = array<i32: 1>} : vector<16x8xi32>
      %c8_i32_23 = arith.constant 8 : i32
      %40 = arith.muli %arg2, %c8_i32_23 : i32
      %41 = vector.broadcast %40 : i32 to vector<16x8xi32>
      %42 = arith.addi %41, %38 : vector<16x8xi32>
      %c8_i32_24 = arith.constant 8 : i32
      %43 = arith.muli %arg3, %c8_i32_24 : i32
      %44 = vector.broadcast %43 : i32 to vector<16x8xi32>
      %45 = arith.addi %44, %39 : vector<16x8xi32>
      %46 = arith.cmpi sle, %45, %42 : vector<16x8xi32>
      %c8_i32_25 = arith.constant 8 : i32
      %47 = vector.broadcast %c8_i32_25 : i32 to vector<16x8xi32>
      %48 = arith.cmpi slt, %45, %47 : vector<16x8xi32>
      %49 = arith.andi %46, %48 : vector<16x8xi1>
      %cst_26 = arith.constant -1.000000e+30 : f32
      %50 = vector.broadcast %cst_26 : f32 to vector<16x8xf32>
      %51 = arith.select %49, %21, %50 : vector<16x8xi1>, vector<16x8xf32>
      %c0_27 = arith.constant 0 : index
      %c0_28 = arith.constant 0 : index
      %52 = vector.load %arg8[%c0_27, %c0_28] : memref<16x1xf32, #tpu.memory_space<vmem>>, vector<16x1xf32>
      %cst_29 = arith.constant dense<0xFF800000> : vector<16xf32>
      %53 = vector.multi_reduction <maximumf>, %51, %cst_29 [1] : vector<16x8xf32> to vector<16xf32>
      %54 = vector.shape_cast %53 : vector<16xf32> to vector<16x1xf32>
      %55 = arith.maximumf %52, %54 : vector<16x1xf32>
      %56 = arith.subf %52, %55 : vector<16x1xf32>
      %57 = math.exp %56 : vector<16x1xf32>
      %58 = vector.broadcast %55 : vector<16x1xf32> to vector<16x8xf32>
      %59 = arith.subf %51, %58 : vector<16x8xf32>
      %60 = math.exp %59 : vector<16x8xf32>
      %cst_30 = arith.constant 0.000000e+00 : f32
      %61 = vector.broadcast %cst_30 : f32 to vector<16x8xf32>
      %62 = arith.select %49, %60, %61 : vector<16x8xi1>, vector<16x8xf32>
      %c0_31 = arith.constant 0 : index
      %c0_32 = arith.constant 0 : index
      %63 = vector.load %arg9[%c0_31, %c0_32] : memref<16x1xf32, #tpu.memory_space<vmem>>, vector<16x1xf32>
      %64 = arith.mulf %57, %63 : vector<16x1xf32>
      %cst_33 = arith.constant dense<0.000000e+00> : vector<16xf32>
      %65 = vector.multi_reduction <add>, %62, %cst_33 [1] : vector<16x8xf32> to vector<16xf32>
      %66 = vector.shape_cast %65 : vector<16xf32> to vector<16x1xf32>
      %67 = arith.addf %64, %66 : vector<16x1xf32>
      %c0_34 = arith.constant 0 : index
      %c0_35 = arith.constant 0 : index
      %68 = vector.load %arg9[%c0_34, %c0_35] : memref<16x1xf32, #tpu.memory_space<vmem>>, vector<16x1xf32>
      tpu.vector_store %arg9[%c0_34, %c0_35], %67 {strides = array<i32>} : memref<16x1xf32, #tpu.memory_space<vmem>>, vector<16x1xf32>,
      %c0_36 = arith.constant 0 : index
      %c0_37 = arith.constant 0 : index
      %69 = vector.load %arg10[%c0_36, %c0_37] : memref<16x16xf32, #tpu.memory_space<vmem>>, vector<16x16xf32>
      %70 = vector.broadcast %57 : vector<16x1xf32> to vector<16x16xf32>
      %71 = arith.mulf %70, %69 : vector<16x16xf32>
      %72 = arith.truncf %62 : vector<16x8xf32> to vector<16x8xbf16>
      %cst_38 = arith.constant dense<0.000000e+00> : vector<16x16xf32>
      %73 = tpu.matmul %72, %18, %cst_38 {dimension_numbers = #tpu.dot_dimension_numbers<[1], [0], [0], [1], [0, 0, 1, 1], [], []>} : vector<16x8xbf16>, vector<8x16xbf16>, vector<16x16xf32> -> vector<16x16xf32>
      %74 = arith.addf %71, %73 : vector<16x16xf32>
      %c0_39 = arith.constant 0 : index
      %c0_40 = arith.constant 0 : index
      %75 = vector.load %arg10[%c0_39, %c0_40] : memref<16x16xf32, #tpu.memory_space<vmem>>, vector<16x16xf32>
      tpu.vector_store %arg10[%c0_39, %c0_40], %74 {strides = array<i32>} : memref<16x16xf32, #tpu.memory_space<vmem>>, vector<16x16xf32>,
      %c0_41 = arith.constant 0 : index
      %c0_42 = arith.constant 0 : index
      %76 = vector.load %arg8[%c0_41, %c0_42] : memref<16x1xf32, #tpu.memory_space<vmem>>, vector<16x1xf32>
      tpu.vector_store %arg8[%c0_41, %c0_42], %55 {strides = array<i32>} : memref<16x1xf32, #tpu.memory_space<vmem>>, vector<16x1xf32>,
    } else {
    }
    %c0_i32_3 = arith.constant 0 : i32
    %9 = arith.cmpi eq, %arg3, %c0_i32_3 : i32
    %10 = arith.extui %9 : i1 to i32
    %c0_i32_4 = arith.constant 0 : i32
    %11 = arith.cmpi ne, %10, %c0_i32_4 : i32
    scf.if %11 {
      %c0 = arith.constant 0 : index
      %c0_5 = arith.constant 0 : index
      %12 = vector.load %arg9[%c0, %c0_5] : memref<16x1xf32, #tpu.memory_space<vmem>>, vector<16x1xf32>
      %13 = tpu.reciprocal %12 {approx = true} : vector<16x1xf32> -> vector<16x1xf32>
      %c0_6 = arith.constant 0 : index
      %c0_7 = arith.constant 0 : index
      %14 = vector.load %arg10[%c0_6, %c0_7] : memref<16x16xf32, #tpu.memory_space<vmem>>, vector<16x16xf32>
      %15 = vector.broadcast %13 : vector<16x1xf32> to vector<16x16xf32>
      %16 = arith.mulf %14, %15 : vector<16x16xf32>
      %17 = vector.shape_cast %16 : vector<16x16xf32> to vector<2x8x16xf32>
      %18 = arith.truncf %17 : vector<2x8x16xf32> to vector<2x8x16xbf16>
      %c0_8 = arith.constant 0 : index
      %c0_9 = arith.constant 0 : index
      %c0_10 = arith.constant 0 : index
      %c0_11 = arith.constant 0 : index
      %c0_12 = arith.constant 0 : index
      %19 = vector.load %arg7[%c0_8, %c0_9, %c0_10, %c0_11, %c0_12] : memref<1x1x2x8x16xbf16, #tpu.memory_space<vmem>>, vector<1x1x2x8x16xbf16>
      %20 = vector.shape_cast %19 : vector<1x1x2x8x16xbf16> to vector<2x8x16xbf16>
      %21 = vector.shape_cast %18 : vector<2x8x16xbf16> to vector<1x1x2x8x16xbf16>
      tpu.vector_store %arg7[%c0_8, %c0_9, %c0_10, %c0_11, %c0_12], %21 {strides = array<i32>} : memref<1x1x2x8x16xbf16, #tpu.memory_space<vmem>>, vector<1x1x2x8x16xbf16>,
    } else {
    }
    return
  }
  func.func @transform_0(%arg0: i32, %arg1: i32, %arg2: i32, %arg3: i32) -> (i32, i32, i32, i32, i32) {
    %c0_i32 = arith.constant 0 : i32
    %c0_i32_0 = arith.constant 0 : i32
    %c0_i32_1 = arith.constant 0 : i32
    return %arg0, %arg1, %c0_i32, %arg2, %c0_i32_0 : i32, i32, i32, i32, i32
  }
  func.func @transform_1(%arg0: i32, %arg1: i32, %arg2: i32, %arg3: i32) -> (i32, i32, i32, i32) {
    %0 = arith.minsi %arg3, %arg2 : i32
    %c0_i32 = arith.constant 0 : i32
    %c0_i32_0 = arith.constant 0 : i32
    return %arg0, %arg1, %0, %c0_i32 : i32, i32, i32, i32
  }
  func.func @transform_2(%arg0: i32, %arg1: i32, %arg2: i32, %arg3: i32) -> (i32, i32, i32, i32) {
    %0 = arith.minsi %arg3, %arg2 : i32
    %c0_i32 = arith.constant 0 : i32
    %c0_i32_0 = arith.constant 0 : i32
    return %arg0, %arg1, %0, %c0_i32 : i32, i32, i32, i32
  }
  func.func @transform_3(%arg0: i32, %arg1: i32, %arg2: i32, %arg3: i32) -> (i32, i32, i32, i32, i32) {
    %c0_i32 = arith.constant 0 : i32
    %c0_i32_0 = arith.constant 0 : i32
    %c0_i32_1 = arith.constant 0 : i32
    return %arg0, %arg1, %c0_i32, %arg2, %c0_i32_0 : i32, i32, i32, i32, i32
  }
}

module attributes {stable_mosaic.version = 11 : i64} {
  func.func @kernel(%arg0: i32, %arg1: i32, %arg2: memref<16x64xbf16, #tpu.memory_space<vmem>>, %arg3: memref<64x64xbf16, #tpu.memory_space<vmem>>, %arg4: memref<16x64xbf16, #tpu.memory_space<vmem>>, %arg5: memref<16x64xbf16, #tpu.memory_space<vmem>>) attributes {dimension_semantics = [#tpu.dimension_semantics<parallel>, #tpu.dimension_semantics<parallel>], iteration_bounds = array<i64: 1, 1>, scalar_prefetch = 0 : i64, scratch_operands = 0 : i64, tpu.core_type = #tpu.core_type<tc>, window_params = [{transform_indices = @transform_0, window_bounds = array<i64: 16, 64>}, {transform_indices = @transform_1, window_bounds = array<i64: 64, 64>}, {transform_indices = @transform_2, window_bounds = array<i64: 16, 64>}, {transform_indices = @transform_3, window_bounds = array<i64: 16, 64>}]} {
    %c0 = arith.constant 0 : index
    %c0_0 = arith.constant 0 : index
    %0 = vector.load %arg2[%c0, %c0_0] : memref<16x64xbf16, #tpu.memory_space<vmem>>, vector<16x64xbf16>
    %c0_1 = arith.constant 0 : index
    %c0_2 = arith.constant 0 : index
    %1 = vector.load %arg3[%c0_1, %c0_2] : memref<64x64xbf16, #tpu.memory_space<vmem>>, vector<64x64xbf16>
    %cst = arith.constant dense<0.000000e+00> : vector<16x64xf32>
    %2 = tpu.matmul %0, %1, %cst {dimension_numbers = #tpu.dot_dimension_numbers<[1], [0], [0], [1], [0, 0, 1, 1], [], []>} : vector<16x64xbf16>, vector<64x64xbf16>, vector<16x64xf32> -> vector<16x64xf32>
    %c0_3 = arith.constant 0 : index
    %c0_4 = arith.constant 0 : index
    %3 = vector.load %arg4[%c0_3, %c0_4] : memref<16x64xbf16, #tpu.memory_space<vmem>>, vector<16x64xbf16>
    %4 = arith.extf %3 : vector<16x64xbf16> to vector<16x64xf32>
    %5 = arith.addf %2, %4 : vector<16x64xf32>
    %6 = arith.truncf %5 : vector<16x64xf32> to vector<16x64xbf16>
    %c0_5 = arith.constant 0 : index
    %c0_6 = arith.constant 0 : index
    %7 = vector.load %arg5[%c0_5, %c0_6] : memref<16x64xbf16, #tpu.memory_space<vmem>>, vector<16x64xbf16>
    tpu.vector_store %arg5[%c0_5, %c0_6], %6 {strides = array<i32>} : memref<16x64xbf16, #tpu.memory_space<vmem>>, vector<16x64xbf16>,
    return
  }
  func.func @transform_0(%arg0: i32, %arg1: i32) -> (i32, i32) {
    %c0_i32 = arith.constant 0 : i32
    %c0_i32_0 = arith.constant 0 : i32
    return %arg0, %c0_i32 : i32, i32
  }
  func.func @transform_1(%arg0: i32, %arg1: i32) -> (i32, i32) {
    %c0_i32 = arith.constant 0 : i32
    %c0_i32_0 = arith.constant 0 : i32
    return %c0_i32, %arg1 : i32, i32
  }
  func.func @transform_2(%arg0: i32, %arg1: i32) -> (i32, i32) {
    %c0_i32 = arith.constant 0 : i32
    return %arg0, %arg1 : i32, i32
  }
  func.func @transform_3(%arg0: i32, %arg1: i32) -> (i32, i32) {
    %c0_i32 = arith.constant 0 : i32
    return %arg0, %arg1 : i32, i32
  }
}

module attributes {stable_mosaic.version = 11 : i64} {
  func.func @kernel(%arg0: i32, %arg1: i32, %arg2: memref<16x64xbf16, #tpu.memory_space<vmem>>, %arg3: memref<64x128xbf16, #tpu.memory_space<vmem>>, %arg4: memref<64x128xbf16, #tpu.memory_space<vmem>>, %arg5: memref<128x64xbf16, #tpu.memory_space<vmem>>, %arg6: memref<1x64xbf16, #tpu.memory_space<vmem>>, %arg7: memref<16x64xbf16, #tpu.memory_space<vmem>>, %arg8: memref<16x64xf32, #tpu.memory_space<vmem>>) attributes {dimension_semantics = [#tpu.dimension_semantics<parallel>, #tpu.dimension_semantics<arbitrary>], iteration_bounds = array<i64: 1, 1>, scalar_prefetch = 0 : i64, scratch_operands = 1 : i64, tpu.core_type = #tpu.core_type<tc>, window_params = [{transform_indices = @transform_0, window_bounds = array<i64: 16, 64>}, {transform_indices = @transform_1, window_bounds = array<i64: 64, 128>}, {transform_indices = @transform_2, window_bounds = array<i64: 64, 128>}, {transform_indices = @transform_3, window_bounds = array<i64: 128, 64>}, {pipeline_mode = #tpu.pipeline_mode<synchronous>, transform_indices = @transform_4, window_bounds = array<i64: 1, 64>}, {transform_indices = @transform_5, window_bounds = array<i64: 16, 64>}]} {
    %c0_i32 = arith.constant 0 : i32
    %0 = arith.cmpi eq, %arg1, %c0_i32 : i32
    %1 = arith.extui %0 : i1 to i32
    %c0_i32_0 = arith.constant 0 : i32
    %2 = arith.cmpi ne, %1, %c0_i32_0 : i32
    scf.if %2 {
      %c0_22 = arith.constant 0 : index
      %c0_23 = arith.constant 0 : index
      %39 = vector.load %arg2[%c0_22, %c0_23] : memref<16x64xbf16, #tpu.memory_space<vmem>>, vector<16x64xbf16>
      %40 = arith.extf %39 : vector<16x64xbf16> to vector<16x64xf32>
      %c0_24 = arith.constant 0 : index
      %c0_25 = arith.constant 0 : index
      %41 = vector.load %arg8[%c0_24, %c0_25] : memref<16x64xf32, #tpu.memory_space<vmem>>, vector<16x64xf32>
      tpu.vector_store %arg8[%c0_24, %c0_25], %40 {strides = array<i32>} : memref<16x64xf32, #tpu.memory_space<vmem>>, vector<16x64xf32>,
    } else {
    }
    %c0 = arith.constant 0 : index
    %c0_1 = arith.constant 0 : index
    %3 = vector.load %arg2[%c0, %c0_1] : memref<16x64xbf16, #tpu.memory_space<vmem>>, vector<16x64xbf16>
    %4 = arith.extf %3 : vector<16x64xbf16> to vector<16x64xf32>
    %5 = arith.mulf %4, %4 : vector<16x64xf32>
    %cst = arith.constant dense<0.000000e+00> : vector<16xf32>
    %6 = vector.multi_reduction <add>, %5, %cst [1] : vector<16x64xf32> to vector<16xf32>
    %7 = vector.shape_cast %6 : vector<16xf32> to vector<16x1xf32>
    %cst_2 = arith.constant 6.400000e+01 : f32
    %8 = vector.broadcast %cst_2 : f32 to vector<16x1xf32>
    %9 = arith.divf %7, %8 : vector<16x1xf32>
    %cst_3 = arith.constant 9.99999974E-6 : f32
    %10 = vector.broadcast %cst_3 : f32 to vector<16x1xf32>
    %11 = arith.addf %9, %10 : vector<16x1xf32>
    %12 = math.rsqrt %11 : vector<16x1xf32>
    %13 = vector.broadcast %12 : vector<16x1xf32> to vector<16x64xf32>
    %14 = arith.mulf %4, %13 : vector<16x64xf32>
    %15 = arith.truncf %14 : vector<16x64xf32> to vector<16x64xbf16>
    %c0_4 = arith.constant 0 : index
    %c0_5 = arith.constant 0 : index
    %16 = vector.load %arg6[%c0_4, %c0_5] : memref<1x64xbf16, #tpu.memory_space<vmem>>, vector<1x64xbf16>
    %17 = vector.broadcast %16 : vector<1x64xbf16> to vector<16x64xbf16>
    %18 = arith.mulf %15, %17 : vector<16x64xbf16>
    %c0_6 = arith.constant 0 : index
    %c0_7 = arith.constant 0 : index
    %19 = vector.load %arg3[%c0_6, %c0_7] : memref<64x128xbf16, #tpu.memory_space<vmem>>, vector<64x128xbf16>
    %cst_8 = arith.constant dense<0.000000e+00> : vector<16x128xf32>
    %20 = tpu.matmul %18, %19, %cst_8 {dimension_numbers = #tpu.dot_dimension_numbers<[1], [0], [0], [1], [0, 0, 1, 1], [], []>} : vector<16x64xbf16>, vector<64x128xbf16>, vector<16x128xf32> -> vector<16x128xf32>
    %c0_9 = arith.constant 0 : index
    %c0_10 = arith.constant 0 : index
    %21 = vector.load %arg4[%c0_9, %c0_10] : memref<64x128xbf16, #tpu.memory_space<vmem>>, vector<64x128xbf16>
    %cst_11 = arith.constant dense<0.000000e+00> : vector<16x128xf32>
    %22 = tpu.matmul %18, %21, %cst_11 {dimension_numbers = #tpu.dot_dimension_numbers<[1], [0], [0], [1], [0, 0, 1, 1], [], []>} : vector<16x64xbf16>, vector<64x128xbf16>, vector<16x128xf32> -> vector<16x128xf32>
    %23 = arith.negf %20 : vector<16x128xf32>
    %24 = math.exp %23 : vector<16x128xf32>
    %cst_12 = arith.constant 1.000000e+00 : f32
    %25 = vector.broadcast %cst_12 : f32 to vector<16x128xf32>
    %26 = arith.addf %25, %24 : vector<16x128xf32>
    %27 = arith.divf %25, %26 : vector<16x128xf32>
    %28 = arith.mulf %20, %27 : vector<16x128xf32>
    %29 = arith.mulf %28, %22 : vector<16x128xf32>
    %30 = arith.truncf %29 : vector<16x128xf32> to vector<16x128xbf16>
    %c0_13 = arith.constant 0 : index
    %c0_14 = arith.constant 0 : index
    %31 = vector.load %arg8[%c0_13, %c0_14] : memref<16x64xf32, #tpu.memory_space<vmem>>, vector<16x64xf32>
    %c0_15 = arith.constant 0 : index
    %c0_16 = arith.constant 0 : index
    %32 = vector.load %arg5[%c0_15, %c0_16] : memref<128x64xbf16, #tpu.memory_space<vmem>>, vector<128x64xbf16>
    %cst_17 = arith.constant dense<0.000000e+00> : vector<16x64xf32>
    %33 = tpu.matmul %30, %32, %cst_17 {dimension_numbers = #tpu.dot_dimension_numbers<[1], [0], [0], [1], [0, 0, 1, 1], [], []>} : vector<16x128xbf16>, vector<128x64xbf16>, vector<16x64xf32> -> vector<16x64xf32>
    %34 = arith.addf %31, %33 : vector<16x64xf32>
    %c0_18 = arith.constant 0 : index
    %c0_19 = arith.constant 0 : index
    %35 = vector.load %arg8[%c0_18, %c0_19] : memref<16x64xf32, #tpu.memory_space<vmem>>, vector<16x64xf32>
    tpu.vector_store %arg8[%c0_18, %c0_19], %34 {strides = array<i32>} : memref<16x64xf32, #tpu.memory_space<vmem>>, vector<16x64xf32>,
    %c0_i32_20 = arith.constant 0 : i32
    %36 = arith.cmpi eq, %arg1, %c0_i32_20 : i32
    %37 = arith.extui %36 : i1 to i32
    %c0_i32_21 = arith.constant 0 : i32
    %38 = arith.cmpi ne, %37, %c0_i32_21 : i32
    scf.if %38 {
      %c0_22 = arith.constant 0 : index
      %c0_23 = arith.constant 0 : index
      %39 = vector.load %arg8[%c0_22, %c0_23] : memref<16x64xf32, #tpu.memory_space<vmem>>, vector<16x64xf32>
      %40 = arith.truncf %39 : vector<16x64xf32> to vector<16x64xbf16>
      %c0_24 = arith.constant 0 : index
      %c0_25 = arith.constant 0 : index
      %41 = vector.load %arg7[%c0_24, %c0_25] : memref<16x64xbf16, #tpu.memory_space<vmem>>, vector<16x64xbf16>
      tpu.vector_store %arg7[%c0_24, %c0_25], %40 {strides = array<i32>} : memref<16x64xbf16, #tpu.memory_space<vmem>>, vector<16x64xbf16>,
    } else {
    }
    return
  }
  func.func @transform_0(%arg0: i32, %arg1: i32) -> (i32, i32) {
    %c0_i32 = arith.constant 0 : i32
    %c0_i32_0 = arith.constant 0 : i32
    return %arg0, %c0_i32 : i32, i32
  }
  func.func @transform_1(%arg0: i32, %arg1: i32) -> (i32, i32) {
    %c0_i32 = arith.constant 0 : i32
    %c0_i32_0 = arith.constant 0 : i32
    return %c0_i32, %arg1 : i32, i32
  }
  func.func @transform_2(%arg0: i32, %arg1: i32) -> (i32, i32) {
    %c0_i32 = arith.constant 0 : i32
    %c0_i32_0 = arith.constant 0 : i32
    return %c0_i32, %arg1 : i32, i32
  }
  func.func @transform_3(%arg0: i32, %arg1: i32) -> (i32, i32) {
    %c0_i32 = arith.constant 0 : i32
    %c0_i32_0 = arith.constant 0 : i32
    return %arg1, %c0_i32 : i32, i32
  }
  func.func @transform_4(%arg0: i32, %arg1: i32) -> (i32, i32) {
    %c0_i32 = arith.constant 0 : i32
    %c0_i32_0 = arith.constant 0 : i32
    %c0_i32_1 = arith.constant 0 : i32
    return %c0_i32, %c0_i32_0 : i32, i32
  }
  func.func @transform_5(%arg0: i32, %arg1: i32) -> (i32, i32) {
    %c0_i32 = arith.constant 0 : i32
    %c0_i32_0 = arith.constant 0 : i32
    return %arg0, %c0_i32 : i32, i32
  }
}

module attributes {stable_mosaic.version = 11 : i64} {
  func.func @kernel(%arg0: i32, %arg1: i32, %arg2: memref<16x64xbf16, #tpu.memory_space<vmem>>, %arg3: memref<64x4xbf16, #tpu.memory_space<vmem>>, %arg4: memref<16x4xbf16, #tpu.memory_space<vmem>>) attributes {dimension_semantics = [#tpu.dimension_semantics<parallel>, #tpu.dimension_semantics<parallel>], iteration_bounds = array<i64: 1, 1>, scalar_prefetch = 0 : i64, scratch_operands = 0 : i64, tpu.core_type = #tpu.core_type<tc>, window_params = [{transform_indices = @transform_0, window_bounds = array<i64: 16, 64>}, {transform_indices = @transform_1, window_bounds = array<i64: 64, 4>}, {transform_indices = @transform_2, window_bounds = array<i64: 16, 4>}]} {
    %c0 = arith.constant 0 : index
    %c0_0 = arith.constant 0 : index
    %0 = vector.load %arg2[%c0, %c0_0] : memref<16x64xbf16, #tpu.memory_space<vmem>>, vector<16x64xbf16>
    %c0_1 = arith.constant 0 : index
    %c0_2 = arith.constant 0 : index
    %1 = vector.load %arg3[%c0_1, %c0_2] : memref<64x4xbf16, #tpu.memory_space<vmem>>, vector<64x4xbf16>
    %cst = arith.constant dense<0.000000e+00> : vector<16x4xf32>
    %2 = tpu.matmul %0, %1, %cst {dimension_numbers = #tpu.dot_dimension_numbers<[1], [0], [0], [1], [0, 0, 1, 1], [], []>} : vector<16x64xbf16>, vector<64x4xbf16>, vector<16x4xf32> -> vector<16x4xf32>
    %3 = arith.truncf %2 : vector<16x4xf32> to vector<16x4xbf16>
    %c0_3 = arith.constant 0 : index
    %c0_4 = arith.constant 0 : index
    %4 = vector.load %arg4[%c0_3, %c0_4] : memref<16x4xbf16, #tpu.memory_space<vmem>>, vector<16x4xbf16>
    tpu.vector_store %arg4[%c0_3, %c0_4], %3 {strides = array<i32>} : memref<16x4xbf16, #tpu.memory_space<vmem>>, vector<16x4xbf16>,
    return
  }
  func.func @transform_0(%arg0: i32, %arg1: i32) -> (i32, i32) {
    %c0_i32 = arith.constant 0 : i32
    %c0_i32_0 = arith.constant 0 : i32
    return %arg0, %c0_i32 : i32, i32
  }
  func.func @transform_1(%arg0: i32, %arg1: i32) -> (i32, i32) {
    %c0_i32 = arith.constant 0 : i32
    %c0_i32_0 = arith.constant 0 : i32
    return %c0_i32, %arg1 : i32, i32
  }
  func.func @transform_2(%arg0: i32, %arg1: i32) -> (i32, i32) {
    %c0_i32 = arith.constant 0 : i32
    return %arg0, %arg1 : i32, i32
  }
}

module attributes {stable_mosaic.version = 11 : i64} {
  func.func @_rmsnorm_kernel(%arg0: i32, %arg1: memref<16x64xbf16, #tpu.memory_space<vmem>>, %arg2: memref<1x64xbf16, #tpu.memory_space<vmem>>, %arg3: memref<16x64xbf16, #tpu.memory_space<vmem>>) attributes {dimension_semantics = [#tpu.dimension_semantics<parallel>], iteration_bounds = array<i64: 1>, scalar_prefetch = 0 : i64, scratch_operands = 0 : i64, tpu.core_type = #tpu.core_type<tc>, window_params = [{transform_indices = @transform_0, window_bounds = array<i64: 16, 64>}, {pipeline_mode = #tpu.pipeline_mode<synchronous>, transform_indices = @transform_1, window_bounds = array<i64: 1, 64>}, {transform_indices = @transform_2, window_bounds = array<i64: 16, 64>}]} {
    %c0 = arith.constant 0 : index
    %c0_0 = arith.constant 0 : index
    %0 = vector.load %arg1[%c0, %c0_0] : memref<16x64xbf16, #tpu.memory_space<vmem>>, vector<16x64xbf16>
    %1 = arith.extf %0 : vector<16x64xbf16> to vector<16x64xf32>
    %2 = arith.mulf %1, %1 : vector<16x64xf32>
    %cst = arith.constant dense<0.000000e+00> : vector<16xf32>
    %3 = vector.multi_reduction <add>, %2, %cst [1] : vector<16x64xf32> to vector<16xf32>
    %4 = vector.shape_cast %3 : vector<16xf32> to vector<16x1xf32>
    %cst_1 = arith.constant 6.400000e+01 : f32
    %5 = vector.broadcast %cst_1 : f32 to vector<16x1xf32>
    %6 = arith.divf %4, %5 : vector<16x1xf32>
    %cst_2 = arith.constant 9.99999974E-6 : f32
    %7 = vector.broadcast %cst_2 : f32 to vector<16x1xf32>
    %8 = arith.addf %6, %7 : vector<16x1xf32>
    %9 = math.rsqrt %8 : vector<16x1xf32>
    %10 = vector.broadcast %9 : vector<16x1xf32> to vector<16x64xf32>
    %11 = arith.mulf %1, %10 : vector<16x64xf32>
    %12 = arith.truncf %11 : vector<16x64xf32> to vector<16x64xbf16>
    %c0_3 = arith.constant 0 : index
    %c0_4 = arith.constant 0 : index
    %13 = vector.load %arg2[%c0_3, %c0_4] : memref<1x64xbf16, #tpu.memory_space<vmem>>, vector<1x64xbf16>
    %14 = vector.broadcast %13 : vector<1x64xbf16> to vector<16x64xbf16>
    %15 = arith.mulf %12, %14 : vector<16x64xbf16>
    %c0_5 = arith.constant 0 : index
    %c0_6 = arith.constant 0 : index
    %16 = vector.load %arg3[%c0_5, %c0_6] : memref<16x64xbf16, #tpu.memory_space<vmem>>, vector<16x64xbf16>
    tpu.vector_store %arg3[%c0_5, %c0_6], %15 {strides = array<i32>} : memref<16x64xbf16, #tpu.memory_space<vmem>>, vector<16x64xbf16>,
    return
  }
  func.func @transform_0(%arg0: i32) -> (i32, i32) {
    %c0_i32 = arith.constant 0 : i32
    %c0_i32_0 = arith.constant 0 : i32
    return %arg0, %c0_i32 : i32, i32
  }
  func.func @transform_1(%arg0: i32) -> (i32, i32) {
    %c0_i32 = arith.constant 0 : i32
    %c0_i32_0 = arith.constant 0 : i32
    %c0_i32_1 = arith.constant 0 : i32
    return %c0_i32, %c0_i32_0 : i32, i32
  }
  func.func @transform_2(%arg0: i32) -> (i32, i32) {
    %c0_i32 = arith.constant 0 : i32
    %c0_i32_0 = arith.constant 0 : i32
    return %arg0, %c0_i32 : i32, i32
  }
}

module attributes {stable_mosaic.version = 11 : i64} {
  func.func @kernel(%arg0: i32, %arg1: i32, %arg2: memref<16x64xbf16, #tpu.memory_space<vmem>>, %arg3: memref<64x64xbf16, #tpu.memory_space<vmem>>, %arg4: memref<64x64xbf16, #tpu.memory_space<vmem>>, %arg5: memref<64x64xbf16, #tpu.memory_space<vmem>>, %arg6: memref<16x64xbf16, #tpu.memory_space<vmem>>, %arg7: memref<16x64xbf16, #tpu.memory_space<vmem>>, %arg8: memref<16x64xf32, #tpu.memory_space<vmem>>) attributes {dimension_semantics = [#tpu.dimension_semantics<parallel>, #tpu.dimension_semantics<arbitrary>], iteration_bounds = array<i64: 1, 1>, scalar_prefetch = 0 : i64, scratch_operands = 1 : i64, tpu.core_type = #tpu.core_type<tc>, window_params = [{transform_indices = @transform_0, window_bounds = array<i64: 16, 64>}, {transform_indices = @transform_1, window_bounds = array<i64: 64, 64>}, {transform_indices = @transform_2, window_bounds = array<i64: 64, 64>}, {transform_indices = @transform_3, window_bounds = array<i64: 64, 64>}, {transform_indices = @transform_4, window_bounds = array<i64: 16, 64>}, {transform_indices = @transform_5, window_bounds = array<i64: 16, 64>}]} {
    %c0_i32 = arith.constant 0 : i32
    %0 = arith.cmpi eq, %arg1, %c0_i32 : i32
    %1 = arith.extui %0 : i1 to i32
    %c0_i32_0 = arith.constant 0 : i32
    %2 = arith.cmpi ne, %1, %c0_i32_0 : i32
    scf.if %2 {
      %c0_17 = arith.constant 0 : index
      %c0_18 = arith.constant 0 : index
      %24 = vector.load %arg6[%c0_17, %c0_18] : memref<16x64xbf16, #tpu.memory_space<vmem>>, vector<16x64xbf16>
      %25 = arith.extf %24 : vector<16x64xbf16> to vector<16x64xf32>
      %c0_19 = arith.constant 0 : index
      %c0_20 = arith.constant 0 : index
      %26 = vector.load %arg8[%c0_19, %c0_20] : memref<16x64xf32, #tpu.memory_space<vmem>>, vector<16x64xf32>
      tpu.vector_store %arg8[%c0_19, %c0_20], %25 {strides = array<i32>} : memref<16x64xf32, #tpu.memory_space<vmem>>, vector<16x64xf32>,
    } else {
    }
    %c0 = arith.constant 0 : index
    %c0_1 = arith.constant 0 : index
    %3 = vector.load %arg2[%c0, %c0_1] : memref<16x64xbf16, #tpu.memory_space<vmem>>, vector<16x64xbf16>
    %c0_2 = arith.constant 0 : index
    %c0_3 = arith.constant 0 : index
    %4 = vector.load %arg3[%c0_2, %c0_3] : memref<64x64xbf16, #tpu.memory_space<vmem>>, vector<64x64xbf16>
    %cst = arith.constant dense<0.000000e+00> : vector<16x64xf32>
    %5 = tpu.matmul %3, %4, %cst {dimension_numbers = #tpu.dot_dimension_numbers<[1], [0], [0], [1], [0, 0, 1, 1], [], []>} : vector<16x64xbf16>, vector<64x64xbf16>, vector<16x64xf32> -> vector<16x64xf32>
    %c0_4 = arith.constant 0 : index
    %c0_5 = arith.constant 0 : index
    %6 = vector.load %arg4[%c0_4, %c0_5] : memref<64x64xbf16, #tpu.memory_space<vmem>>, vector<64x64xbf16>
    %cst_6 = arith.constant dense<0.000000e+00> : vector<16x64xf32>
    %7 = tpu.matmul %3, %6, %cst_6 {dimension_numbers = #tpu.dot_dimension_numbers<[1], [0], [0], [1], [0, 0, 1, 1], [], []>} : vector<16x64xbf16>, vector<64x64xbf16>, vector<16x64xf32> -> vector<16x64xf32>
    %8 = arith.negf %5 : vector<16x64xf32>
    %9 = math.exp %8 : vector<16x64xf32>
    %cst_7 = arith.constant 1.000000e+00 : f32
    %10 = vector.broadcast %cst_7 : f32 to vector<16x64xf32>
    %11 = arith.addf %10, %9 : vector<16x64xf32>
    %12 = arith.divf %10, %11 : vector<16x64xf32>
    %13 = arith.mulf %5, %12 : vector<16x64xf32>
    %14 = arith.mulf %13, %7 : vector<16x64xf32>
    %15 = arith.truncf %14 : vector<16x64xf32> to vector<16x64xbf16>
    %c0_8 = arith.constant 0 : index
    %c0_9 = arith.constant 0 : index
    %16 = vector.load %arg8[%c0_8, %c0_9] : memref<16x64xf32, #tpu.memory_space<vmem>>, vector<16x64xf32>
    %c0_10 = arith.constant 0 : index
    %c0_11 = arith.constant 0 : index
    %17 = vector.load %arg5[%c0_10, %c0_11] : memref<64x64xbf16, #tpu.memory_space<vmem>>, vector<64x64xbf16>
    %cst_12 = arith.constant dense<0.000000e+00> : vector<16x64xf32>
    %18 = tpu.matmul %15, %17, %cst_12 {dimension_numbers = #tpu.dot_dimension_numbers<[1], [0], [0], [1], [0, 0, 1, 1], [], []>} : vector<16x64xbf16>, vector<64x64xbf16>, vector<16x64xf32> -> vector<16x64xf32>
    %19 = arith.addf %16, %18 : vector<16x64xf32>
    %c0_13 = arith.constant 0 : index
    %c0_14 = arith.constant 0 : index
    %20 = vector.load %arg8[%c0_13, %c0_14] : memref<16x64xf32, #tpu.memory_space<vmem>>, vector<16x64xf32>
    tpu.vector_store %arg8[%c0_13, %c0_14], %19 {strides = array<i32>} : memref<16x64xf32, #tpu.memory_space<vmem>>, vector<16x64xf32>,
    %c0_i32_15 = arith.constant 0 : i32
    %21 = arith.cmpi eq, %arg1, %c0_i32_15 : i32
    %22 = arith.extui %21 : i1 to i32
    %c0_i32_16 = arith.constant 0 : i32
    %23 = arith.cmpi ne, %22, %c0_i32_16 : i32
    scf.if %23 {
      %c0_17 = arith.constant 0 : index
      %c0_18 = arith.constant 0 : index
      %24 = vector.load %arg8[%c0_17, %c0_18] : memref<16x64xf32, #tpu.memory_space<vmem>>, vector<16x64xf32>
      %25 = arith.truncf %24 : vector<16x64xf32> to vector<16x64xbf16>
      %c0_19 = arith.constant 0 : index
      %c0_20 = arith.constant 0 : index
      %26 = vector.load %arg7[%c0_19, %c0_20] : memref<16x64xbf16, #tpu.memory_space<vmem>>, vector<16x64xbf16>
      tpu.vector_store %arg7[%c0_19, %c0_20], %25 {strides = array<i32>} : memref<16x64xbf16, #tpu.memory_space<vmem>>, vector<16x64xbf16>,
    } else {
    }
    return
  }
  func.func @transform_0(%arg0: i32, %arg1: i32) -> (i32, i32) {
    %c0_i32 = arith.constant 0 : i32
    %c0_i32_0 = arith.constant 0 : i32
    return %arg0, %c0_i32 : i32, i32
  }
  func.func @transform_1(%arg0: i32, %arg1: i32) -> (i32, i32) {
    %c0_i32 = arith.constant 0 : i32
    %c0_i32_0 = arith.constant 0 : i32
    return %c0_i32, %arg1 : i32, i32
  }
  func.func @transform_2(%arg0: i32, %arg1: i32) -> (i32, i32) {
    %c0_i32 = arith.constant 0 : i32
    %c0_i32_0 = arith.constant 0 : i32
    return %c0_i32, %arg1 : i32, i32
  }
  func.func @transform_3(%arg0: i32, %arg1: i32) -> (i32, i32) {
    %c0_i32 = arith.constant 0 : i32
    %c0_i32_0 = arith.constant 0 : i32
    return %arg1, %c0_i32 : i32, i32
  }
  func.func @transform_4(%arg0: i32, %arg1: i32) -> (i32, i32) {
    %c0_i32 = arith.constant 0 : i32
    %c0_i32_0 = arith.constant 0 : i32
    return %arg0, %c0_i32 : i32, i32
  }
  func.func @transform_5(%arg0: i32, %arg1: i32) -> (i32, i32) {
    %c0_i32 = arith.constant 0 : i32
    %c0_i32_0 = arith.constant 0 : i32
    return %arg0, %c0_i32 : i32, i32
  }
}

module attributes {stable_mosaic.version = 11 : i64} {
  func.func @_moe_kernel(%arg0: i32, %arg1: i32, %arg2: i32, %arg3: memref<16x64xbf16, #tpu.memory_space<vmem>>, %arg4: memref<16x4xbf16, #tpu.memory_space<vmem>>, %arg5: memref<1x64x64xbf16, #tpu.memory_space<vmem>>, %arg6: memref<1x64x64xbf16, #tpu.memory_space<vmem>>, %arg7: memref<1x64x64xbf16, #tpu.memory_space<vmem>>, %arg8: memref<16x64xbf16, #tpu.memory_space<vmem>>, %arg9: memref<16x64xbf16, #tpu.memory_space<vmem>>, %arg10: memref<16x64xf32, #tpu.memory_space<vmem>>, %arg11: memref<16x1xf32, #tpu.memory_space<vmem>>) attributes {dimension_semantics = [#tpu.dimension_semantics<parallel>, #tpu.dimension_semantics<arbitrary>, #tpu.dimension_semantics<arbitrary>], iteration_bounds = array<i64: 1, 4, 1>, scalar_prefetch = 0 : i64, scratch_operands = 2 : i64, tpu.core_type = #tpu.core_type<tc>, window_params = [{transform_indices = @transform_0, window_bounds = array<i64: 16, 64>}, {transform_indices = @transform_1, window_bounds = array<i64: 16, 4>}, {transform_indices = @transform_2, window_bounds = array<i64: 1, 64, 64>}, {transform_indices = @transform_3, window_bounds = array<i64: 1, 64, 64>}, {transform_indices = @transform_4, window_bounds = array<i64: 1, 64, 64>}, {transform_indices = @transform_5, window_bounds = array<i64: 16, 64>}, {transform_indices = @transform_6, window_bounds = array<i64: 16, 64>}]} {
    %c0_i32 = arith.constant 0 : i32
    %0 = arith.cmpi eq, %arg1, %c0_i32 : i32
    %c0_i32_0 = arith.constant 0 : i32
    %1 = arith.cmpi eq, %arg2, %c0_i32_0 : i32
    %2 = arith.andi %0, %1 : i1
    %3 = arith.extui %2 : i1 to i32
    %c0_i32_1 = arith.constant 0 : i32
    %4 = arith.cmpi ne, %3, %c0_i32_1 : i32
    scf.if %4 {
      %c0_25 = arith.constant 0 : index
      %c0_26 = arith.constant 0 : index
      %39 = vector.load %arg8[%c0_25, %c0_26] : memref<16x64xbf16, #tpu.memory_space<vmem>>, vector<16x64xbf16>
      %40 = arith.extf %39 : vector<16x64xbf16> to vector<16x64xf32>
      %c0_27 = arith.constant 0 : index
      %c0_28 = arith.constant 0 : index
      %41 = vector.load %arg10[%c0_27, %c0_28] : memref<16x64xf32, #tpu.memory_space<vmem>>, vector<16x64xf32>
      tpu.vector_store %arg10[%c0_27, %c0_28], %40 {strides = array<i32>} : memref<16x64xf32, #tpu.memory_space<vmem>>, vector<16x64xf32>,
    } else {
    }
    %c0_i32_2 = arith.constant 0 : i32
    %5 = arith.cmpi eq, %arg2, %c0_i32_2 : i32
    %6 = arith.extui %5 : i1 to i32
    %c0_i32_3 = arith.constant 0 : i32
    %7 = arith.cmpi ne, %6, %c0_i32_3 : i32
    scf.if %7 {
      %c0_25 = arith.constant 0 : index
      %c0_26 = arith.constant 0 : index
      %39 = vector.load %arg4[%c0_25, %c0_26] : memref<16x4xbf16, #tpu.memory_space<vmem>>, vector<16x4xbf16>
      %40 = arith.extf %39 : vector<16x4xbf16> to vector<16x4xf32>
      %41 = tpu.iota {dimensions = array<i32: 1>} : vector<16x4xi32>
      %42 = vector.broadcast %arg1 : i32 to vector<16x4xi32>
      %43 = arith.cmpi eq, %41, %42 : vector<16x4xi32>
      %cst_27 = arith.constant 0.000000e+00 : f32
      %44 = vector.broadcast %cst_27 : f32 to vector<16x4xf32>
      %45 = arith.select %43, %40, %44 : vector<16x4xi1>, vector<16x4xf32>
      %cst_28 = arith.constant dense<0.000000e+00> : vector<16xf32>
      %46 = vector.multi_reduction <add>, %45, %cst_28 [1] : vector<16x4xf32> to vector<16xf32>
      %47 = vector.shape_cast %46 : vector<16xf32> to vector<16x1xf32>
      %c0_29 = arith.constant 0 : index
      %c0_30 = arith.constant 0 : index
      %48 = vector.load %arg11[%c0_29, %c0_30] : memref<16x1xf32, #tpu.memory_space<vmem>>, vector<16x1xf32>
      tpu.vector_store %arg11[%c0_29, %c0_30], %47 {strides = array<i32>} : memref<16x1xf32, #tpu.memory_space<vmem>>, vector<16x1xf32>,
    } else {
    }
    %c0 = arith.constant 0 : index
    %c0_4 = arith.constant 0 : index
    %8 = vector.load %arg3[%c0, %c0_4] : memref<16x64xbf16, #tpu.memory_space<vmem>>, vector<16x64xbf16>
    %c0_5 = arith.constant 0 : index
    %c0_6 = arith.constant 0 : index
    %9 = vector.load %arg11[%c0_5, %c0_6] : memref<16x1xf32, #tpu.memory_space<vmem>>, vector<16x1xf32>
    %c0_7 = arith.constant 0 : index
    %c0_8 = arith.constant 0 : index
    %c0_9 = arith.constant 0 : index
    %10 = vector.load %arg5[%c0_7, %c0_8, %c0_9] : memref<1x64x64xbf16, #tpu.memory_space<vmem>>, vector<1x64x64xbf16>
    %11 = vector.shape_cast %10 : vector<1x64x64xbf16> to vector<64x64xbf16>
    %cst = arith.constant dense<0.000000e+00> : vector<16x64xf32>
    %12 = tpu.matmul %8, %11, %cst {dimension_numbers = #tpu.dot_dimension_numbers<[1], [0], [0], [1], [0, 0, 1, 1], [], []>} : vector<16x64xbf16>, vector<64x64xbf16>, vector<16x64xf32> -> vector<16x64xf32>
    %13 = vector.broadcast %9 : vector<16x1xf32> to vector<16x64xf32>
    %14 = arith.mulf %12, %13 : vector<16x64xf32>
    %c0_10 = arith.constant 0 : index
    %c0_11 = arith.constant 0 : index
    %c0_12 = arith.constant 0 : index
    %15 = vector.load %arg6[%c0_10, %c0_11, %c0_12] : memref<1x64x64xbf16, #tpu.memory_space<vmem>>, vector<1x64x64xbf16>
    %16 = vector.shape_cast %15 : vector<1x64x64xbf16> to vector<64x64xbf16>
    %cst_13 = arith.constant dense<0.000000e+00> : vector<16x64xf32>
    %17 = tpu.matmul %8, %16, %cst_13 {dimension_numbers = #tpu.dot_dimension_numbers<[1], [0], [0], [1], [0, 0, 1, 1], [], []>} : vector<16x64xbf16>, vector<64x64xbf16>, vector<16x64xf32> -> vector<16x64xf32>
    %18 = vector.broadcast %9 : vector<16x1xf32> to vector<16x64xf32>
    %19 = arith.mulf %17, %18 : vector<16x64xf32>
    %20 = arith.negf %14 : vector<16x64xf32>
    %21 = math.exp %20 : vector<16x64xf32>
    %cst_14 = arith.constant 1.000000e+00 : f32
    %22 = vector.broadcast %cst_14 : f32 to vector<16x64xf32>
    %23 = arith.addf %22, %21 : vector<16x64xf32>
    %24 = arith.divf %22, %23 : vector<16x64xf32>
    %25 = arith.mulf %14, %24 : vector<16x64xf32>
    %26 = arith.mulf %25, %19 : vector<16x64xf32>
    %27 = arith.truncf %26 : vector<16x64xf32> to vector<16x64xbf16>
    %c0_15 = arith.constant 0 : index
    %c0_16 = arith.constant 0 : index
    %28 = vector.load %arg10[%c0_15, %c0_16] : memref<16x64xf32, #tpu.memory_space<vmem>>, vector<16x64xf32>
    %c0_17 = arith.constant 0 : index
    %c0_18 = arith.constant 0 : index
    %c0_19 = arith.constant 0 : index
    %29 = vector.load %arg7[%c0_17, %c0_18, %c0_19] : memref<1x64x64xbf16, #tpu.memory_space<vmem>>, vector<1x64x64xbf16>
    %30 = vector.shape_cast %29 : vector<1x64x64xbf16> to vector<64x64xbf16>
    %cst_20 = arith.constant dense<0.000000e+00> : vector<16x64xf32>
    %31 = tpu.matmul %27, %30, %cst_20 {dimension_numbers = #tpu.dot_dimension_numbers<[1], [0], [0], [1], [0, 0, 1, 1], [], []>} : vector<16x64xbf16>, vector<64x64xbf16>, vector<16x64xf32> -> vector<16x64xf32>
    %32 = arith.addf %28, %31 : vector<16x64xf32>
    %c0_21 = arith.constant 0 : index
    %c0_22 = arith.constant 0 : index
    %33 = vector.load %arg10[%c0_21, %c0_22] : memref<16x64xf32, #tpu.memory_space<vmem>>, vector<16x64xf32>
    tpu.vector_store %arg10[%c0_21, %c0_22], %32 {strides = array<i32>} : memref<16x64xf32, #tpu.memory_space<vmem>>, vector<16x64xf32>,
    %c3_i32 = arith.constant 3 : i32
    %34 = arith.cmpi eq, %arg1, %c3_i32 : i32
    %c0_i32_23 = arith.constant 0 : i32
    %35 = arith.cmpi eq, %arg2, %c0_i32_23 : i32
    %36 = arith.andi %34, %35 : i1
    %37 = arith.extui %36 : i1 to i32
    %c0_i32_24 = arith.constant 0 : i32
    %38 = arith.cmpi ne, %37, %c0_i32_24 : i32
    scf.if %38 {
      %c0_25 = arith.constant 0 : index
      %c0_26 = arith.constant 0 : index
      %39 = vector.load %arg10[%c0_25, %c0_26] : memref<16x64xf32, #tpu.memory_space<vmem>>, vector<16x64xf32>
      %40 = arith.truncf %39 : vector<16x64xf32> to vector<16x64xbf16>
      %c0_27 = arith.constant 0 : index
      %c0_28 = arith.constant 0 : index
      %41 = vector.load %arg9[%c0_27, %c0_28] : memref<16x64xbf16, #tpu.memory_space<vmem>>, vector<16x64xbf16>
      tpu.vector_store %arg9[%c0_27, %c0_28], %40 {strides = array<i32>} : memref<16x64xbf16, #tpu.memory_space<vmem>>, vector<16x64xbf16>,
    } else {
    }
    return
  }
  func.func @transform_0(%arg0: i32, %arg1: i32, %arg2: i32) -> (i32, i32) {
    %c0_i32 = arith.constant 0 : i32
    %c0_i32_0 = arith.constant 0 : i32
    return %arg0, %c0_i32 : i32, i32
  }
  func.func @transform_1(%arg0: i32, %arg1: i32, %arg2: i32) -> (i32, i32) {
    %c0_i32 = arith.constant 0 : i32
    %c0_i32_0 = arith.constant 0 : i32
    return %arg0, %c0_i32 : i32, i32
  }
  func.func @transform_2(%arg0: i32, %arg1: i32, %arg2: i32) -> (i32, i32, i32) {
    %c0_i32 = arith.constant 0 : i32
    %c0_i32_0 = arith.constant 0 : i32
    return %arg1, %c0_i32, %arg2 : i32, i32, i32
  }
  func.func @transform_3(%arg0: i32, %arg1: i32, %arg2: i32) -> (i32, i32, i32) {
    %c0_i32 = arith.constant 0 : i32
    %c0_i32_0 = arith.constant 0 : i32
    return %arg1, %c0_i32, %arg2 : i32, i32, i32
  }
  func.func @transform_4(%arg0: i32, %arg1: i32, %arg2: i32) -> (i32, i32, i32) {
    %c0_i32 = arith.constant 0 : i32
    %c0_i32_0 = arith.constant 0 : i32
    return %arg1, %arg2, %c0_i32 : i32, i32, i32
  }
  func.func @transform_5(%arg0: i32, %arg1: i32, %arg2: i32) -> (i32, i32) {
    %c0_i32 = arith.constant 0 : i32
    %c0_i32_0 = arith.constant 0 : i32
    return %arg0, %c0_i32 : i32, i32
  }
  func.func @transform_6(%arg0: i32, %arg1: i32, %arg2: i32) -> (i32, i32) {
    %c0_i32 = arith.constant 0 : i32
    %c0_i32_0 = arith.constant 0 : i32
    return %arg0, %c0_i32 : i32, i32
  }
}

module attributes {stable_mosaic.version = 11 : i64} {
  func.func @_rmsnorm_kernel(%arg0: i32, %arg1: memref<16x64xbf16, #tpu.memory_space<vmem>>, %arg2: memref<1x64xbf16, #tpu.memory_space<vmem>>, %arg3: memref<16x64xbf16, #tpu.memory_space<vmem>>) attributes {dimension_semantics = [#tpu.dimension_semantics<parallel>], iteration_bounds = array<i64: 1>, scalar_prefetch = 0 : i64, scratch_operands = 0 : i64, tpu.core_type = #tpu.core_type<tc>, window_params = [{transform_indices = @transform_0, window_bounds = array<i64: 16, 64>}, {pipeline_mode = #tpu.pipeline_mode<synchronous>, transform_indices = @transform_1, window_bounds = array<i64: 1, 64>}, {transform_indices = @transform_2, window_bounds = array<i64: 16, 64>}]} {
    %c0 = arith.constant 0 : index
    %c0_0 = arith.constant 0 : index
    %0 = vector.load %arg1[%c0, %c0_0] : memref<16x64xbf16, #tpu.memory_space<vmem>>, vector<16x64xbf16>
    %1 = arith.extf %0 : vector<16x64xbf16> to vector<16x64xf32>
    %2 = arith.mulf %1, %1 : vector<16x64xf32>
    %cst = arith.constant dense<0.000000e+00> : vector<16xf32>
    %3 = vector.multi_reduction <add>, %2, %cst [1] : vector<16x64xf32> to vector<16xf32>
    %4 = vector.shape_cast %3 : vector<16xf32> to vector<16x1xf32>
    %cst_1 = arith.constant 6.400000e+01 : f32
    %5 = vector.broadcast %cst_1 : f32 to vector<16x1xf32>
    %6 = arith.divf %4, %5 : vector<16x1xf32>
    %cst_2 = arith.constant 9.99999974E-6 : f32
    %7 = vector.broadcast %cst_2 : f32 to vector<16x1xf32>
    %8 = arith.addf %6, %7 : vector<16x1xf32>
    %9 = math.rsqrt %8 : vector<16x1xf32>
    %10 = vector.broadcast %9 : vector<16x1xf32> to vector<16x64xf32>
    %11 = arith.mulf %1, %10 : vector<16x64xf32>
    %12 = arith.truncf %11 : vector<16x64xf32> to vector<16x64xbf16>
    %c0_3 = arith.constant 0 : index
    %c0_4 = arith.constant 0 : index
    %13 = vector.load %arg2[%c0_3, %c0_4] : memref<1x64xbf16, #tpu.memory_space<vmem>>, vector<1x64xbf16>
    %14 = vector.broadcast %13 : vector<1x64xbf16> to vector<16x64xbf16>
    %15 = arith.mulf %12, %14 : vector<16x64xbf16>
    %c0_5 = arith.constant 0 : index
    %c0_6 = arith.constant 0 : index
    %16 = vector.load %arg3[%c0_5, %c0_6] : memref<16x64xbf16, #tpu.memory_space<vmem>>, vector<16x64xbf16>
    tpu.vector_store %arg3[%c0_5, %c0_6], %15 {strides = array<i32>} : memref<16x64xbf16, #tpu.memory_space<vmem>>, vector<16x64xbf16>,
    return
  }
  func.func @transform_0(%arg0: i32) -> (i32, i32) {
    %c0_i32 = arith.constant 0 : i32
    %c0_i32_0 = arith.constant 0 : i32
    return %arg0, %c0_i32 : i32, i32
  }
  func.func @transform_1(%arg0: i32) -> (i32, i32) {
    %c0_i32 = arith.constant 0 : i32
    %c0_i32_0 = arith.constant 0 : i32
    %c0_i32_1 = arith.constant 0 : i32
    return %c0_i32, %c0_i32_0 : i32, i32
  }
  func.func @transform_2(%arg0: i32) -> (i32, i32) {
    %c0_i32 = arith.constant 0 : i32
    %c0_i32_0 = arith.constant 0 : i32
    return %arg0, %c0_i32 : i32, i32
  }
}

</mosaic_0001>

<bundles_post_ra>
// kernel: _lambda_.15
= control target key start
LH: loop header
LB: loop body
LE: loop exit
PB: predicated region body
PF: predicated region fallthrough
CT: control target
= control target key end

     0   :  { %vm32_vm0 = vcmask 130048   ;;  %vm122_vm1 = vcmask 125952   ;;  %s288_s0 = inlined_call_operand.vmem [shape: bf16[64,16], index: 0, kind: input, shape index: {}]   ;;  %s289_s1 = inlined_call_operand.vmem [shape: bf16[64,16], index: 1, kind: output, shape index: {}]  }
   0x1   :  { %v167_v0 = vld [vmem:[%s288_s0 + $0x8] sm:$0xff]   ;;  %v152_v1 = vld [vmem:[%s288_s0] sm:$0xff]   ;;  %v168_v2 = vld [vmem:[%s288_s0 + $0x10] sm:$0xff]  }
   0x2   :  { %v205_v3 = vunpack.c.l.bf16 %v167_v0  ;;  %v207_v4 = vunpack.c.l.bf16 %v152_v1  ;;  %v209_v5 = vunpack.c.h.bf16 %v167_v0  ;;  %v211_v6 = vunpack.c.h.bf16 %v152_v1  ;;  %v169_v13 = vld [vmem:[%s288_s0 + $0x18] sm:$0xff]  }
   0x3   :  { %v213_v7 = vunpack.c.h.bf16 %v168_v2  ;;  %v215_v8 = vunpack.c.l.bf16 %v168_v2  ;;  %v230_v16 = vunpack.c.h.bf16 %v169_v13  ;;  %v232_v17 = vunpack.c.l.bf16 %v169_v13 }
   0x4   :  { %v26_v9 = vmul.f32 %v205_v3, %v205_v3  ;;  %v24_v10 = vmul.f32 %v207_v4, %v207_v4  ;;  %v27_v11 = vmul.f32 %v209_v5, %v209_v5  ;;  %v25_v12 = vmul.f32 %v211_v6, %v211_v6 }
   0x5   :  { %v29_v20 = vmul.f32 %v213_v7, %v213_v7  ;;  %v28_v21 = vmul.f32 %v215_v8, %v215_v8  ;;  %v31_v24 = vmul.f32 %v230_v16, %v230_v16  ;;  %v30_v25 = vmul.f32 %v232_v17, %v232_v17 }
   0x6   :  { %v39_v14 = vsel %vm32_vm0, %v26_v9, 0.0  ;;  %v33_v15 = vsel %vm32_vm0, %v24_v10, 0.0  ;;  %v42_v18 = vsel %vm32_vm0, %v27_v11, 0.0  ;;  %v36_v19 = vsel %vm32_vm0, %v25_v12, 0.0 }
   0x7   :  { %40 = vadd.xlane.f32.xlu1 %v39_v14  ;;  %34 = vadd.xlane.f32.xlu0 %v33_v15  ;;  %v48_v22 = vsel %vm32_vm0, %v29_v20, 0.0  ;;  %v45_v23 = vsel %vm32_vm0, %v28_v21, 0.0  ;;  %v54_v26 = vsel %vm32_vm0, %v31_v24, 0.0  ;;  %v51_v27 = vsel %vm32_vm0, %v30_v25, 0.0 }
   0xb   :  { %43 = vadd.xlane.f32.xlu1 %v42_v18  ;;  %37 = vadd.xlane.f32.xlu0 %v36_v19 }
   0xf   :  { %49 = vadd.xlane.f32.xlu1 %v48_v22  ;;  %46 = vadd.xlane.f32.xlu0 %v45_v23 }
  0x13   :  { %55 = vadd.xlane.f32.xlu1 %v54_v26  ;;  %52 = vadd.xlane.f32.xlu0 %v51_v27 }
  0x94   :  { %v41_v28 = vpop.xlane.xlu1 %40  ;;  %v35_v29 = vpop.xlane.xlu0 %34 }
  0x95   :  { %v60_v30 = vmul.f32 0.0625, %v41_v28  ;;  %v58_v31 = vmul.f32 0.0625, %v35_v29 }
  0x97   :  { %v68_v32 = vadd.f32 1e-05, %v60_v30  ;;  %v66_v33 = vadd.f32 1e-05, %v58_v31 }
  0x98   :  { %v44_v34 = vpop.xlane.xlu1 %43  ;;  %v38_v35 = vpop.xlane.xlu0 %37 }
  0x99   :  { %170 = vrsqrt.f32 %v68_v32  ;;  %v61_v36 = vmul.f32 0.0625, %v44_v34  ;;  %v59_v37 = vmul.f32 0.0625, %v38_v35 }
  0x9a   :  { %172 = vrsqrt.f32 %v66_v33 }
  0x9b   :  { %v69_v38 = vadd.f32 1e-05, %v61_v36  ;;  %v67_v39 = vadd.f32 1e-05, %v59_v37 }
  0x9c   :  { %v50_v40 = vpop.xlane.xlu1 %49  ;;  %v47_v41 = vpop.xlane.xlu0 %46 }
  0x9d   :  { %174 = vrsqrt.f32 %v69_v38  ;;  %v63_v42 = vmul.f32 0.0625, %v50_v40  ;;  %v62_v43 = vmul.f32 0.0625, %v47_v41 }
  0x9e   :  { %176 = vrsqrt.f32 %v67_v39 }
  0x9f   :  { %v71_v44 = vadd.f32 1e-05, %v63_v42  ;;  %v70_v45 = vadd.f32 1e-05, %v62_v43 }
  0xa0   :  { %v56_v46 = vpop.xlane.xlu1 %55  ;;  %v53_v47 = vpop.xlane.xlu0 %52 }
  0xa1   :  { %178 = vrsqrt.f32 %v71_v44  ;;  %v65_v48 = vmul.f32 0.0625, %v56_v46  ;;  %v64_v49 = vmul.f32 0.0625, %v53_v47 }
  0xa2   :  { %180 = vrsqrt.f32 %v70_v45 }
  0xa3   :  { %v171_v50 = vpop.eup %170  ;;  %v73_v51 = vadd.f32 1e-05, %v65_v48  ;;  %v72_v52 = vadd.f32 1e-05, %v64_v49 }
  0xa4   :  { %v173_v53 = vpop.eup %172  ;;  %v84_v54 = vmul.f32 %v171_v50, %v205_v3 }
  0xa5   :  { %v82_v55 = vmul.f32 %v173_v53, %v207_v4  ;;  %182 = vrsqrt.f32 %v73_v51 }
  0xa6   :  { %v145_v56 = vpack.c.bf16 %v84_v54, %v84_v54  ;;  %184 = vrsqrt.f32 %v72_v52 }
  0xa7   :  { %v175_v57 = vpop.eup %174  ;;  %v143_v58 = vpack.c.bf16 %v82_v55, %v82_v55 }
  0xa8   :  { %v177_v59 = vpop.eup %176  ;;  %125 = vst.msk [vmem:[%s289_s1 + $0x8] sm:$0xf] %vm122_vm1, %v145_v56  ;;  %v85_v60 = vmul.f32 %v175_v57, %v209_v5 }
  0xa9   :  { %123 = vst.msk [vmem:[%s289_s1] sm:$0xf] %vm122_vm1, %v143_v58  ;;  %v83_v61 = vmul.f32 %v177_v59, %v211_v6 }
  0xaa   :  { %v146_v62 = vpack.c.bf16 %v85_v60, %v85_v60 }
  0xab   :  { %v179_v63 = vpop.eup %178  ;;  %v144_v0 = vpack.c.bf16 %v83_v61, %v83_v61 }
  0xac   :  { %v181_v1 = vpop.eup %180  ;;  %126 = vst.msk [vmem:[%s289_s1 + $0xc] sm:$0xf] %vm122_vm1, %v146_v62  ;;  %v87_v2 = vmul.f32 %v179_v63, %v213_v7 }
  0xad   :  { %124 = vst.msk [vmem:[%s289_s1 + $0x4] sm:$0xf] %vm122_vm1, %v144_v0  ;;  %v86_v3 = vmul.f32 %v181_v1, %v215_v8 }
  0xae   :  { %v148_v4 = vpack.c.bf16 %v87_v2, %v87_v2 }
  0xaf   :  { %v183_v5 = vpop.eup %182  ;;  %v147_v6 = vpack.c.bf16 %v86_v3, %v86_v3 }
  0xb0   :  { %v185_v9 = vpop.eup %184  ;;  %128 = vst.msk [vmem:[%s289_s1 + $0x14] sm:$0xf] %vm122_vm1, %v148_v4  ;;  %v89_v10 = vmul.f32 %v183_v5, %v230_v16 }
  0xb1   :  { %127 = vst.msk [vmem:[%s289_s1 + $0x10] sm:$0xf] %vm122_vm1, %v147_v6  ;;  %v88_v7 = vmul.f32 %v185_v9, %v232_v17 }
  0xb2   :  { %v150_v11 = vpack.c.bf16 %v89_v10, %v89_v10 }
  0xb3   :  { %v149_v8 = vpack.c.bf16 %v88_v7, %v88_v7 }
  0xb4   :  { %130 = vst.msk [vmem:[%s289_s1 + $0x1c] sm:$0xf] %vm122_vm1, %v150_v11 }
  0xb5   :  { %129 = vst.msk [vmem:[%s289_s1 + $0x18] sm:$0xf] %vm122_vm1, %v149_v8 }

// kernel: _lambda_.14
= control target key start
LH: loop header
LB: loop body
LE: loop exit
PB: predicated region body
PF: predicated region fallthrough
CT: control target
= control target key end

     0   :  { %vm21_vm0 = vcmask 523264   ;;  %v182_v8 = vmov 0.0   ;;  %vm183_vm1 = vmmov 0   ;;  %v42_v18 = vlaneseq  ;;  %s228_s0 = inlined_call_operand.vmem [shape: bf16[16,64], index: 0, kind: input, shape index: {}]   ;;  %s229_s1 = inlined_call_operand.vmem [shape: bf16[64,128], index: 1, kind: input, shape index: {}]   ;;  %s230_s2 = inlined_call_operand.vmem [shape: bf16[1,64], index: 2, kind: input, shape index: {}]   ;;  %s231_s3 = inlined_call_operand.vmem [shape: bf16[16,128], index: 3, kind: output, shape index: {}]  }
   0x1   :  { %v147_v0 = vld [vmem:[%s228_s0] sm:$0xff]   ;;  %160 = vmatprep.subr.bf16.mxu0 %v182_v8  ;;  %v175_v9 = vld [vmem:[%s229_s1 + $0x8] sm:$0xff]   ;;  %168 = vmatprep.mubr.msk.bf16.mxu0 %vm183_vm1, %v182_v8  ;;  %v176_v10 = vld [vmem:[%s229_s1 + $0x10] sm:$0xff]  }
   0x2   :  { %v148_v1 = vunpack.c.l.bf16 %v147_v0  ;;  %v149_v2 = vunpack.c.h.bf16 %v147_v0  ;;  %v174_v7 = vld [vmem:[%s229_s1] sm:$0xff]   ;;  %v177_v11 = vld [vmem:[%s229_s1 + $0x18] sm:$0xff]   ;;  %v43_v19 = vshrl.u32 %v42_v18, 7 }
   0x3   :  { %161 = vmatpush3.bf16.msra.mxu0 %v174_v7  ;;  %v38_v20 = vld [vmem:[%s230_s2] sm:$0x1] }
   0x4   :  { %v19_v3 = vmul.f32 %v148_v1, %v148_v1  ;;  %v20_v4 = vmul.f32 %v149_v2, %v149_v2  ;;  %162 = vmatprep.subr.bf16.mxu0 %v182_v8  ;;  %v40_v21 = vpack.i.b16 %v38_v20, %v38_v20  ;;  %v44_v22 = vsub.s32 0, %v43_v19 }
   0x6   :  { %v22_v5 = vsel %vm21_vm0, %v19_v3, 0.0  ;;  %v25_v6 = vsel %vm21_vm0, %v20_v4, 0.0  ;;  %v45_v27 = vrot.slane %v40_v21, %v44_v22 }
   0x7   :  { %23 = vadd.xlane.f32.xlu0 %v22_v5  ;;  %163 = vmatpush3.bf16.msra.mxu0 %v175_v9 }
   0x8   :  { %164 = vmatprep.subr.bf16.mxu0 %v182_v8 }
   0xb   :  { %26 = vadd.xlane.f32.xlu0 %v25_v6  ;;  %165 = vmatpush3.bf16.msra.mxu0 %v176_v10 }
   0xc   :  { %166 = vmatprep.subr.bf16.mxu0 %v182_v8 }
   0xf   :  { %167 = vmatpush3.bf16.msra.mxu0 %v177_v11 }
  0x94   :  { %v24_v12 = vpop.xlane.xlu0 %23 }
  0x95   :  { %v29_v13 = vmul.f32 0.015625, %v24_v12 }
  0x97   :  { %v31_v14 = vadd.f32 1e-05, %v29_v13 }
  0x98   :  { %v27_v15 = vpop.xlane.xlu0 %26 }
  0x99   :  { %v30_v16 = vmul.f32 0.015625, %v27_v15  ;;  %178 = vrsqrt.f32 %v31_v14 }
  0x9b   :  { %v32_v17 = vadd.f32 1e-05, %v30_v16 }
  0x9d   :  { %180 = vrsqrt.f32 %v32_v17 }
  0xa3   :  { %v179_v23 = vpop.eup %178 }
  0xa4   :  { %v35_v25 = vmul.f32 %v179_v23, %v148_v1 }
  0xa7   :  { %v181_v24 = vpop.eup %180 }
  0xa8   :  { %v36_v26 = vmul.f32 %v181_v24, %v149_v2 }
  0xaa   :  { %v37_v28 = vpack.c.bf16 %v36_v26, %v35_v25 }
  0xac   :  { %v46_v29 = vmul.bf16 %v45_v27, %v37_v28 }
  0xae   :  { %169 = vmatmul.mubr.msk.bf16.vlgmr.msra.gmra.mrb[0].mxu0 %vm21_vm0, %v46_v29 }
 0x181   :  { %v116_v30 = vpop.f32.mrb[0].mxu0 }
 0x182   :  { %v170_v31 = vpop.f32.mrb[1].mxu0 }
 0x183   :  { %v119_v32 = vpop.f32.mrb[2].mxu0 }
 0x184   :  { %v153_v33 = vpack.c.bf16 %v119_v32, %v116_v30  ;;  %v171_v34 = vpop.f32.mrb[3].mxu0 }
 0x186   :  { %154 = vst [vmem:[%s231_s3] sm:$0xff] %v153_v33  }

// kernel: _lambda_.16
= control target key start
LH: loop header
LB: loop body
LE: loop exit
PB: predicated region body
PF: predicated region fallthrough
CT: control target
= control target key end

     0   :  { %vm20_vm0 = vcmask 130048   ;;  %vm66_vm1 = vcmask 125952   ;;  %s128_s0 = inlined_call_operand.vmem [shape: bf16[32,16], index: 0, kind: input, shape index: {}]   ;;  %s129_s1 = inlined_call_operand.vmem [shape: bf16[32,16], index: 1, kind: output, shape index: {}]  }
   0x1   :  { %v91_v0 = vld [vmem:[%s128_s0 + $0x8] sm:$0xff]   ;;  %v84_v1 = vld [vmem:[%s128_s0] sm:$0xff]  }
   0x2   :  { %v89_v2 = vunpack.c.l.bf16 %v91_v0  ;;  %v85_v3 = vunpack.c.l.bf16 %v84_v1  ;;  %v90_v4 = vunpack.c.h.bf16 %v91_v0  ;;  %v86_v5 = vunpack.c.h.bf16 %v84_v1 }
   0x4   :  { %v18_v6 = vmul.f32 %v89_v2, %v89_v2  ;;  %v16_v7 = vmul.f32 %v85_v3, %v85_v3  ;;  %v19_v8 = vmul.f32 %v90_v4, %v90_v4  ;;  %v17_v9 = vmul.f32 %v86_v5, %v86_v5 }
   0x6   :  { %v27_v10 = vsel %vm20_vm0, %v18_v6, 0.0  ;;  %v21_v11 = vsel %vm20_vm0, %v16_v7, 0.0  ;;  %v30_v12 = vsel %vm20_vm0, %v19_v8, 0.0  ;;  %v24_v13 = vsel %vm20_vm0, %v17_v9, 0.0 }
   0x7   :  { %28 = vadd.xlane.f32.xlu1 %v27_v10  ;;  %22 = vadd.xlane.f32.xlu0 %v21_v11 }
   0xb   :  { %31 = vadd.xlane.f32.xlu1 %v30_v12  ;;  %25 = vadd.xlane.f32.xlu0 %v24_v13 }
  0x94   :  { %v29_v14 = vpop.xlane.xlu1 %28  ;;  %v23_v15 = vpop.xlane.xlu0 %22 }
  0x95   :  { %v36_v16 = vmul.f32 0.0625, %v29_v14  ;;  %v34_v17 = vmul.f32 0.0625, %v23_v15 }
  0x97   :  { %v40_v18 = vadd.f32 1e-05, %v36_v16  ;;  %v38_v19 = vadd.f32 1e-05, %v34_v17 }
  0x98   :  { %v32_v20 = vpop.xlane.xlu1 %31  ;;  %v26_v21 = vpop.xlane.xlu0 %25 }
  0x99   :  { %92 = vrsqrt.f32 %v40_v18  ;;  %v37_v22 = vmul.f32 0.0625, %v32_v20  ;;  %v35_v23 = vmul.f32 0.0625, %v26_v21 }
  0x9a   :  { %94 = vrsqrt.f32 %v38_v19 }
  0x9b   :  { %v41_v24 = vadd.f32 1e-05, %v37_v22  ;;  %v39_v25 = vadd.f32 1e-05, %v35_v23 }
  0x9d   :  { %96 = vrsqrt.f32 %v41_v24 }
  0x9e   :  { %98 = vrsqrt.f32 %v39_v25 }
  0xa3   :  { %v93_v26 = vpop.eup %92 }
  0xa4   :  { %v95_v27 = vpop.eup %94  ;;  %v48_v28 = vmul.f32 %v93_v26, %v89_v2 }
  0xa5   :  { %v46_v29 = vmul.f32 %v95_v27, %v85_v3 }
  0xa6   :  { %v81_v30 = vpack.c.bf16 %v48_v28, %v48_v28 }
  0xa7   :  { %v97_v31 = vpop.eup %96  ;;  %v79_v32 = vpack.c.bf16 %v46_v29, %v46_v29 }
  0xa8   :  { %v99_v33 = vpop.eup %98  ;;  %69 = vst.msk [vmem:[%s129_s1 + $0x8] sm:$0xf] %vm66_vm1, %v81_v30  ;;  %v49_v34 = vmul.f32 %v97_v31, %v90_v4 }
  0xa9   :  { %67 = vst.msk [vmem:[%s129_s1] sm:$0xf] %vm66_vm1, %v79_v32  ;;  %v47_v35 = vmul.f32 %v99_v33, %v86_v5 }
  0xaa   :  { %v82_v36 = vpack.c.bf16 %v49_v34, %v49_v34 }
  0xab   :  { %v80_v37 = vpack.c.bf16 %v47_v35, %v47_v35 }
  0xac   :  { %70 = vst.msk [vmem:[%s129_s1 + $0xc] sm:$0xf] %vm66_vm1, %v82_v36 }
  0xad   :  { %68 = vst.msk [vmem:[%s129_s1 + $0x4] sm:$0xf] %vm66_vm1, %v80_v37 }

// kernel: _lambda_.17
= control target key start
LH: loop header
LB: loop body
LE: loop exit
PB: predicated region body
PF: predicated region fallthrough
CT: control target
= control target key end

     0   :  { %s932_s12 = smov 0   ;;  %s934_s13 = smov 0   ;;  %s1038_s0 = inlined_call_operand.vmem [shape: bf16[2,2,2,8,16], index: 0, kind: input, shape index: {}]   ;;  %s1039_s1 = inlined_call_operand.vmem [shape: bf16[2,2,8,16], index: 1, kind: input, shape index: {}]   ;;  %s1040_s2 = inlined_call_operand.vmem [shape: bf16[2,2,8,16], index: 2, kind: input, shape index: {}]   ;;  %s1041_s3 = inlined_call_operand.vmem [shape: bf16[2,2,2,8,16], index: 3, kind: output, shape index: {}]  }
   0x1   :  { %s936_s14 = smov 0   ;;  %s938_s15 = smov 0  }
   0x2   :  { %s940_s16 = smov 0  }
   0x3 LB: > { %s35_s17 = sadd.s32 1, %s898_s14  ;;  %s39_s18 = sadd.s32 1, %s902_s15  ;;  %s906_s16 = sphi %s940_s16, %s13_s16   ;;  %s902_s15 = sphi %s938_s15, %s1049_s15   ;;  %s898_s14 = sphi %s936_s14, %s1048_s14   ;;  %s894_s13 = sphi %s934_s13, %s1047_s13   ;;  %s890_s12 = sphi %s932_s12, %s1046_s12  }
   0x4   : > { %p37_p0 = scmp.ge.s32.totalorder %s35_s17, 2  ;;  %p777_p1 = scmp.ge.s32.totalorder %s906_s16, 1 }
   0x5   : > { %p234_p2 = scmp.lt.s32.totalorder %s906_s16, 5 }
   0x6   : > { %s1051_s17 = smov (%p37_p0, %s35_s17), 0  ;;  %s1053_s18 = smov (!%p37_p0, %s39_s18), %s902_s15 }
   0x7   : > { %p235_p3 = pnand %p777_p1, %p234_p2  ;;  %p41_p4 = scmp.ge.s32.totalorder %s1053_s18, 2 }
   0x8   : > { %p298_p5 = scmp.lt.s32.totalorder (!%p235_p3), %s894_s13, 1  ;;  %p300_p6 = scmp.lt.s32.totalorder (!%p235_p3), %s890_s12, 1  ;;  %vm362_vm0 = vcmask (!%p235_p3), 130048   ;;  %v908_v0 = vmov (!%p235_p3), 0.0   ;;  %vm909_vm1 = vmmov (!%p235_p3), 0   ;;  %vm357_vm2 = vcmask (!%p235_p3), 7168  }
   0x9   : > { %s1055_s18 = smov (%p41_p4, %s1053_s18), 0  ;;  %238 = sbr.rel (%p235_p3) target bundleno = 835 (0x343), region = 32 }
   0xa   : > { %797 = vmatprep.subr.bf16.mxu0 (!%p235_p3), %v908_v0  ;;  %363 = vst.msk [vmem:[#allocation4] sm:$0xff] (!%p235_p3), %vm362_vm0, %v908_v0  ;;  %364 = vst.msk [vmem:[#allocation4 + $0x8] sm:$0xff] (!%p235_p3), %vm362_vm0, %v908_v0  ;;  %799 = vmatprep.mubr.msk.bf16.mxu0 (!%p235_p3), %vm909_vm1, %v908_v0  ;;  %v910_v4 = vmov (!%p235_p3), -inf   ;;  %v431_v5 = vlaneseq (!%p235_p3)  ;;  %vm474_vm7 = vcmask (!%p235_p3), 64512   ;;  %v911_v23 = vmov (!%p235_p3), 0  }
   0xb   : > { %803 = vmatprep.subr.bf16.mxu1 (!%p235_p3), %v908_v0  ;;  %805 = vmatprep.mubr.msk.bf16.mxu1 (!%p235_p3), %vm909_vm1, %v908_v0  ;;  %358 = vst.msk [vmem:[#allocation2] sm:$0xff] (!%p235_p3), %vm357_vm2, %v910_v4  ;;  %359 = vst.msk [vmem:[#allocation2 + $0x8] sm:$0xff] (!%p235_p3), %vm357_vm2, %v910_v4  ;;  %vm540_vm9 = vcmask (!%p235_p3), 1043456   ;;  %vm614_vm10 = vcmask (!%p235_p3), 125952  }
   0xc   : > { %360 = vst.msk [vmem:[#allocation3] sm:$0xff] (!%p235_p3), %vm357_vm2, %v908_v0  ;;  %361 = vst.msk [vmem:[#allocation3 + $0x8] sm:$0xff] (!%p235_p3), %vm357_vm2, %v908_v0  ;;  %v432_v6 = vshrl.u32 (!%p235_p3), %v431_v5, 7  ;;  %v459_v9 = vand.u32 (!%p235_p3), 127, %v431_v5  ;;  %853 = vset.pattern.permute.xlu1 (!%p235_p3), %v911_v23  ;;  %854 = vset.pattern.permute.xlu0 (!%p235_p3), %v911_v23 }
   0xe   : > { %v433_v7 = vadd.s32 (!%p235_p3), 8, %v432_v6  ;;  %v438_v8 = vand.u32 (!%p235_p3), 7, %v432_v6  ;;  %vm467_vm4 = vcmp.lt.s32.totalorder (!%p235_p3), %v459_v9, 8 }
  0x10   : > { %s1057_s13 = smov (!%p298_p5, %s894_s13), 1  ;;  %s1059_s12 = smov (!%p300_p6, %s890_s12), 1  ;;  %v445_v10 = vand.u32 7, %v433_v7  ;;  %vm465_vm3 = vcmp.le.s32.totalorder %v459_v9, %v438_v8 }
  0x11   : > { %s779_s19 = sshll.u32 %s1057_s13, 2  ;;  %s781_s20 = sshll.u32 %s1057_s13, 1  ;;  %vm986_vm6 = vmand %vm465_vm3, %vm467_vm4  ;;  %v522_v63 = vld [vmem:[#allocation4] sm:$0xff] }
  0x12   : > { %s778_s21 = sshll.u32 %s1059_s12, 1  ;;  %s964_s22 = sadd.s32 %s781_s20, %s1059_s12  ;;  %vm466_vm5 = vcmp.le.s32.totalorder %v459_v9, %v445_v10  ;;  %v472_v24 = vld [vmem:[#allocation2] sm:$0xff]  ;;  %v473_v27 = vld [vmem:[#allocation2 + $0x8] sm:$0xff] }
  0x13   : > { %s966_s23 = sadd.s32 %s779_s19, %s778_s21  ;;  %s782_s24 = sshll.u32 %s964_s22, 2  ;;  %vm990_vm8 = vmand %vm466_vm5, %vm467_vm4  ;;  %v507_v51 = vld [vmem:[#allocation3] sm:$0xff]  ;;  %v508_v54 = vld [vmem:[#allocation3 + $0x8] sm:$0xff] }
  0x14   : > { %s780_s25 = sshll.u32 %s966_s23, 2  ;;  %s322_s28 = scalar_lea.vmem %s1039_s1, %s782_s24 }
  0x15   : > { %s309_s4 = scalar_lea.vmem %s1038_s0, %s780_s25  ;;  %v374_v1 = vld [vmem:[%s322_s28] sm:$0xf]  ;;  %s337_s7 = scalar_lea.vmem %s1040_s2, %s782_s24 }
  0x16   : > { %v386_v2 = vsel %vm362_vm0, %v374_v1, 0  ;;  %v855_v3 = vld [vmem:[%s309_s4] sm:$0xff]   ;;  %v523_v1 = vld [vmem:[#allocation4 + $0x8] sm:$0xff]  ;;  %s351_s10 = scalar_lea.vmem %s1041_s3, %s780_s25 }
  0x17   : > { %798 = vmatpush3.bf16.xpose.msra.mxu0 %v386_v2  ;;  %v375_v32 = vld [vmem:[%s337_s7] sm:$0xf] }
  0x18   : > { %v542_v33 = vsel %vm540_vm9, %v375_v32, 0 }
  0x19   : > { %804 = vmatpush3.bf16.msra.mxu1 %v542_v33 }
  0x1e   : > { %800 = vmatmul.mubr.msk.bf16.vlgmr.msra.gmra.mrb[0].mxu0 %vm362_vm0, %v855_v3 }
  0xf1   : > { %v422_v11 = vpop.f32.mrb[0].mxu0 }
  0xf2   : > { %v429_v13 = vmul.f32 0.25, %v422_v11  ;;  %v801_v14 = vpop.f32.mrb[1].mxu0 }
  0xf3   : > { %v425_v15 = vpop.f32.mrb[2].mxu0 }
  0xf4   : > { %v430_v17 = vmul.f32 0.25, %v425_v15  ;;  %v802_v18 = vpop.f32.mrb[3].mxu0  ;;  %v470_v19 = vsel %vm986_vm6, %v429_v13, -1e+30 }
  0xf5   : > { %v475_v20 = vsel %vm474_vm7, %v470_v19, -inf }
  0xf6   : > { %476 = vmax.xlane.f32.xlu0 %v475_v20  ;;  %v471_v21 = vsel %vm990_vm8, %v430_v17, -1e+30 }
  0xf7   : > { %v478_v22 = vsel %vm474_vm7, %v471_v21, -inf }
  0xfa   : > { %479 = vmax.xlane.f32.xlu0 %v478_v22 }
 0x183   : > { %v477_v25 = vpop.xlane.xlu0 %476 }
 0x184   : > { %v481_v26 = vmax.f32 %v472_v24, %v477_v25 }
 0x186   : > { %v483_v28 = vsub.f32 %v472_v24, %v481_v26  ;;  %589 = vst.msk [vmem:[#allocation2] sm:$0xff] %vm357_vm2, %v481_v26  ;;  %491 = vperm.xlu1 %853, %v481_v26  }
 0x187   : > { %v480_v29 = vpop.xlane.xlu0 %479 }
 0x188   : > { %v482_v30 = vmax.f32 %v473_v27, %v480_v29  ;;  %v485_v48 = vmul.f32 1.442695, %v483_v28 }
 0x18a   : > { %v484_v31 = vsub.f32 %v473_v27, %v482_v30  ;;  %590 = vst.msk [vmem:[#allocation2 + $0x8] sm:$0xff] %vm357_vm2, %v482_v30  ;;  %496 = vperm.xlu1 %853, %v482_v30  }
 0x18c   : > { %v487_v47 = vmul.f32 1.442695, %v484_v31 }
 0x205   : > { %v492_v34 = vpop.permute.xlu1 %491 }
 0x206   : > { %v499_v35 = vsub.f32 %v470_v19, %v492_v34 }
 0x208   : > { %v501_v36 = vmul.f32 1.442695, %v499_v35 }
 0x209   : > { %v497_v37 = vpop.permute.xlu1 %496 }
 0x20a   : > { %856 = vpow2.f32 %v501_v36  ;;  %v500_v38 = vsub.f32 %v471_v21, %v497_v37 }
 0x20c   : > { %v503_v39 = vmul.f32 1.442695, %v500_v38 }
 0x20e   : > { %858 = vpow2.f32 %v503_v39 }
 0x20f   : > { %860 = vpow2.f32 %v487_v47 }
 0x210   : > { %862 = vpow2.f32 %v485_v48 }
 0x214   : > { %v857_v40 = vpop.eup %856 }
 0x215   : > { %v505_v41 = vsel %vm986_vm6, %v857_v40, 0.0 }
 0x216   : > { %v511_v42 = vsel %vm474_vm7, %v505_v41, 0.0 }
 0x217   : > { %512 = vadd.xlane.f32.xlu0 %v511_v42 }
 0x218   : > { %v859_v43 = vpop.eup %858 }
 0x219   : > { %v506_v44 = vsel %vm990_vm8, %v859_v43, 0.0  ;;  %v861_v49 = vpop.eup %860 }
 0x21a   : > { %v514_v45 = vsel %vm474_vm7, %v506_v44, 0.0  ;;  %v536_v46 = vpack.c.bf16 %v506_v44, %v505_v41  ;;  %v863_v50 = vpop.eup %862  ;;  %v510_v56 = vmul.f32 %v861_v49, %v508_v54 }
 0x21b   : > { %515 = vadd.xlane.f32.xlu1 %v514_v45  ;;  %v509_v52 = vmul.f32 %v863_v50, %v507_v51 }
 0x21c   : > { %806 = vmatmul.mubr.msk.bf16.vlgmr.msra.gmra.mrb[0].mxu1 %vm474_vm7, %v536_v46 }
 0x22c   : > { %531 = vperm.xlu1 %853, %v861_v49  }
 0x22d   : > { %526 = vperm.xlu0 %854, %v863_v50  }
 0x2a4   : > { %v513_v53 = vpop.xlane.xlu0 %512 }
 0x2a5   : > { %v517_v55 = vadd.f32 %v513_v53, %v509_v52 }
 0x2a7   : > { %520 = vst.msk [vmem:[#allocation3] sm:$0xff] %vm357_vm2, %v517_v55 }
 0x2a8   : > { %v516_v57 = vpop.xlane.xlu1 %515 }
 0x2a9   : > { %v518_v58 = vadd.f32 %v516_v57, %v510_v56 }
 0x2ab   : > { %521 = vst.msk [vmem:[#allocation3 + $0x8] sm:$0xff] %vm357_vm2, %v518_v58 }
 0x2ac   : > { %v527_v0 = vpop.permute.xlu0 %526  ;;  %v532_v2 = vpop.permute.xlu1 %531 }
 0x2ad   : > { %v534_v3 = vmul.f32 %v527_v0, %v522_v63  ;;  %v535_v5 = vmul.f32 %v532_v2, %v523_v1 }
 0x2ae   : > { %v594_v59 = vld [vmem:[#allocation3] sm:$0xff] }
 0x2af   : > { %864 = vrcp.f32 %v594_v59 }
 0x2b2   : > { %v595_v60 = vld [vmem:[#allocation3 + $0x8] sm:$0xff] }
 0x2b3   : > { %866 = vrcp.f32 %v595_v60 }
 0x2b9   : > { %v865_v61 = vpop.eup %864 }
 0x2ba   : > { %602 = vperm.xlu0 %854, %v865_v61  }
 0x2bd   : > { %v867_v62 = vpop.eup %866 }
 0x2be   : > { %607 = vperm.xlu0 %854, %v867_v62  }
 0x2ef   : > { %v578_v4 = vpop.f32.mrb[0].mxu1 }
 0x2f0   : > { %v585_v6 = vadd.f32 %v578_v4, %v534_v3  ;;  %v807_v7 = vpop.f32.mrb[1].mxu1 }
 0x2f1   : > { %v581_v8 = vpop.f32.mrb[2].mxu1 }
 0x2f2   : > { %587 = vst.msk [vmem:[#allocation4] sm:$0xff] %vm362_vm0, %v585_v6  ;;  %v586_v9 = vadd.f32 %v581_v8, %v535_v5  ;;  %v808_v10 = vpop.f32.mrb[3].mxu1 }
 0x2f4   : > { %588 = vst.msk [vmem:[#allocation4 + $0x8] sm:$0xff] %vm362_vm0, %v586_v9 }
 0x2f9   : > { %v598_v11 = vld [vmem:[#allocation4] sm:$0xff] }
 0x2fb   : > { %v599_v15 = vld [vmem:[#allocation4 + $0x8] sm:$0xff] }
 0x339   : > { %v603_v12 = vpop.permute.xlu0 %602 }
 0x33a   : > { %v610_v13 = vmul.f32 %v603_v12, %v598_v11 }
 0x33c   : > { %v612_v14 = vpack.c.bf16 %v610_v13, %v610_v13 }
 0x33d   : > { %v608_v16 = vpop.permute.xlu0 %607 }
 0x33e   : > { %615 = vst.msk [vmem:[%s351_s10] sm:$0xf] %vm614_vm10, %v612_v14  ;;  %v611_v17 = vmul.f32 %v608_v16, %v599_v15 }
 0x340   : > { %v613_v18 = vpack.c.bf16 %v611_v17, %v611_v17 }
 0x342   : > { %616 = vst.msk [vmem:[%s351_s10 + $0x4] sm:$0xf] %vm614_vm10, %v613_v18 }
 0x343 PF: > { %s13_s16 = sadd.s32 1, %s906_s16   ;;  %s1046_s12 = smov %s898_s14 }
 0x344   : > { %p10_p7 = scmp.ge.s32.totalorder %s13_s16, 6   ;;  %s1047_s13 = smov %s902_s15 }
 0x345   : > { %s1048_s14 = smov %s1051_s17  ;;  %s1049_s15 = smov %s1055_s18 }
 0x346   :  { %12 = sbr.rel (!%p10_p7) target bundleno = 3 (0x3), region = 80 }

// kernel: _lambda_.18
= control target key start
LH: loop header
LB: loop body
LE: loop exit
PB: predicated region body
PF: predicated region fallthrough
CT: control target
= control target key end

     0   :  { %v156_v0 = vmov 0.0   ;;  %vm157_vm0 = vmmov 0   ;;  %vm58_vm1 = vcmask 523264   ;;  %vm111_vm2 = vcmask 519168   ;;  %s202_s1 = inlined_call_operand.vmem [shape: bf16[64,64], index: 1, kind: input, shape index: {}]   ;;  %s203_s0 = inlined_call_operand.vmem [shape: bf16[16,64], index: 0, kind: input, shape index: {}]   ;;  %s204_s2 = inlined_call_operand.vmem [shape: bf16[16,64], index: 2, kind: input, shape index: {}]   ;;  %s205_s3 = inlined_call_operand.vmem [shape: bf16[16,64], index: 3, kind: output, shape index: {}]  }
   0x1   :  { %137 = vmatprep.subr.bf16.mxu0 %v156_v0  ;;  %v151_v1 = vld [vmem:[%s202_s1] sm:$0xff]   ;;  %145 = vmatprep.mubr.msk.bf16.mxu0 %vm157_vm0, %v156_v0  ;;  %v152_v2 = vld [vmem:[%s202_s1 + $0x8] sm:$0xff]   ;;  %v153_v3 = vld [vmem:[%s202_s1 + $0x10] sm:$0xff]  }
   0x2   :  { %138 = vmatpush3.bf16.msra.mxu0 %v151_v1  ;;  %v154_v4 = vld [vmem:[%s202_s1 + $0x18] sm:$0xff]   ;;  %v155_v5 = vld [vmem:[%s203_s0] sm:$0xff]  }
   0x3   :  { %139 = vmatprep.subr.bf16.mxu0 %v156_v0  ;;  %v129_v6 = vld [vmem:[%s204_s2] sm:$0xff]  }
   0x4   :  { %v130_v7 = vunpack.c.l.bf16 %v129_v6  ;;  %v131_v8 = vunpack.c.h.bf16 %v129_v6 }
   0x6   :  { %140 = vmatpush3.bf16.msra.mxu0 %v152_v2 }
   0x7   :  { %141 = vmatprep.subr.bf16.mxu0 %v156_v0 }
   0xa   :  { %142 = vmatpush3.bf16.msra.mxu0 %v153_v3 }
   0xb   :  { %143 = vmatprep.subr.bf16.mxu0 %v156_v0 }
   0xe   :  { %144 = vmatpush3.bf16.msra.mxu0 %v154_v4 }
  0x11   :  { %146 = vmatmul.mubr.msk.bf16.vlgmr.msra.gmra.mrb[0].mxu0 %vm58_vm1, %v155_v5 }
  0xe4   :  { %v96_v9 = vpop.f32.mrb[0].mxu0 }
  0xe5   :  { %v97_v10 = vadd.f32 %v130_v7, %v96_v9  ;;  %v147_v11 = vpop.f32.mrb[1].mxu0 }
  0xe6   :  { %v99_v12 = vpop.f32.mrb[2].mxu0 }
  0xe7   :  { %v126_v13 = vpack.c.bf16 %v97_v10, %v97_v10  ;;  %v100_v14 = vadd.f32 %v131_v8, %v99_v12  ;;  %v148_v15 = vpop.f32.mrb[3].mxu0 }
  0xe9   :  { %112 = vst.msk [vmem:[%s205_s3] sm:$0xf] %vm111_vm2, %v126_v13  ;;  %v127_v16 = vpack.c.bf16 %v100_v14, %v100_v14 }
  0xeb   :  { %113 = vst.msk [vmem:[%s205_s3 + $0x4] sm:$0xf] %vm111_vm2, %v127_v16 }

// kernel: _lambda_.19
= control target key start
LH: loop header
LB: loop body
LE: loop exit
PB: predicated region body
PF: predicated region fallthrough
CT: control target
= control target key end

     0   :  { %vm29_vm0 = vcmask 523264   ;;  %v486_v8 = vmov 0.0   ;;  %vm487_vm1 = vmmov 0   ;;  %v59_v18 = vlaneseq  ;;  %s608_s0 = inlined_call_operand.vmem [shape: bf16[16,64], index: 0, kind: input, shape index: {}]   ;;  %s609_s1 = inlined_call_operand.vmem [shape: bf16[64,128], index: 1, kind: input, shape index: {}]   ;;  %s610_s2 = inlined_call_operand.vmem [shape: bf16[64,128], index: 2, kind: input, shape index: {}]   ;;  %s611_s4 = inlined_call_operand.vmem [shape: bf16[1,64], index: 4, kind: input, shape index: {}]   ;;  %s612_s3 = inlined_call_operand.vmem [shape: bf16[128,64], index: 3, kind: input, shape index: {}]   ;;  %s613_s5 = inlined_call_operand.vmem [shape: bf16[16,64], index: 5, kind: output, shape index: {}]  }
   0x1   :  { %v390_v0 = vld [vmem:[%s608_s0] sm:$0xff]   ;;  %412 = vmatprep.subr.bf16.mxu1 %v486_v8  ;;  %436 = vmatprep.subr.bf16.mxu0 %v486_v8  ;;  %v459_v9 = vld [vmem:[%s609_s1 + $0x8] sm:$0xff]   ;;  %v460_v10 = vld [vmem:[%s609_s1 + $0x10] sm:$0xff]   ;;  %vm354_vm2 = vcmask 519168  }
   0x2   :  { %v391_v1 = vunpack.c.l.bf16 %v390_v0  ;;  %v388_v2 = vunpack.c.h.bf16 %v390_v0  ;;  %v458_v7 = vld [vmem:[%s609_s1] sm:$0xff]   ;;  %420 = vmatprep.mubr.msk.bf16.mxu1 %vm487_vm1, %v486_v8  ;;  %452 = vmatprep.mubr.msk.bf16.mxu0 %vm487_vm1, %v486_v8  ;;  %v461_v11 = vld [vmem:[%s609_s1 + $0x18] sm:$0xff]   ;;  %v60_v19 = vshrl.u32 %v59_v18, 7  ;;  %v463_v31 = vld [vmem:[%s610_s2 + $0x8] sm:$0xff]  }
   0x3   :  { %413 = vmatpush3.bf16.msra.mxu1 %v458_v7  ;;  %v55_v20 = vld [vmem:[%s611_s4] sm:$0x1]  ;;  %v464_v32 = vld [vmem:[%s610_s2 + $0x10] sm:$0xff]   ;;  %v465_v33 = vld [vmem:[%s610_s2 + $0x18] sm:$0xff]  }
   0x4   :  { %v36_v3 = vmul.f32 %v391_v1, %v391_v1  ;;  %30 = vst.msk [vmem:[#allocation2] sm:$0xff] %vm29_vm0, %v391_v1  ;;  %31 = vst.msk [vmem:[#allocation2 + $0x8] sm:$0xff] %vm29_vm0, %v388_v2  ;;  %v37_v4 = vmul.f32 %v388_v2, %v388_v2  ;;  %414 = vmatprep.subr.bf16.mxu1 %v486_v8  ;;  %v57_v21 = vpack.i.b16 %v55_v20, %v55_v20  ;;  %v462_v29 = vld [vmem:[%s610_s2] sm:$0xff]   ;;  %v467_v35 = vld [vmem:[%s612_s3 + $0x8] sm:$0xff]  }
   0x5   :  { %v61_v22 = vsub.s32 0, %v60_v19  ;;  %v466_v34 = vld [vmem:[%s612_s3] sm:$0xff]   ;;  %v468_v36 = vld [vmem:[%s612_s3 + $0x10] sm:$0xff]   ;;  %v469_v37 = vld [vmem:[%s612_s3 + $0x18] sm:$0xff]  }
   0x6   :  { %v39_v5 = vsel %vm29_vm0, %v36_v3, 0.0  ;;  %v42_v6 = vsel %vm29_vm0, %v37_v4, 0.0  ;;  %437 = vmatpush3.bf16.msra.mxu0 %v466_v34  ;;  %v470_v38 = vld [vmem:[%s612_s3 + $0x20] sm:$0xff]   ;;  %v471_v39 = vld [vmem:[%s612_s3 + $0x28] sm:$0xff]   ;;  %v472_v40 = vld [vmem:[%s612_s3 + $0x30] sm:$0xff]  }
   0x7   :  { %40 = vadd.xlane.f32.xlu0 %v39_v5  ;;  %415 = vmatpush3.bf16.msra.mxu1 %v459_v9  ;;  %v62_v27 = vrot.slane %v57_v21, %v61_v22  ;;  %v473_v41 = vld [vmem:[%s612_s3 + $0x38] sm:$0xff]  }
   0x8   :  { %416 = vmatprep.subr.bf16.mxu1 %v486_v8  ;;  %438 = vmatprep.subr.bf16.mxu0 %v486_v8 }
   0xa   :  { %439 = vmatpush3.bf16.msra.mxu0 %v467_v35 }
   0xb   :  { %43 = vadd.xlane.f32.xlu0 %v42_v6  ;;  %417 = vmatpush3.bf16.msra.mxu1 %v460_v10  ;;  %v230_v63 = vld [vmem:[#allocation2] sm:$0xff] }
   0xc   :  { %418 = vmatprep.subr.bf16.mxu1 %v486_v8  ;;  %440 = vmatprep.subr.bf16.mxu0 %v486_v8 }
   0xe   :  { %441 = vmatpush3.bf16.msra.mxu0 %v468_v36 }
   0xf   :  { %419 = vmatpush3.bf16.msra.mxu1 %v461_v11  ;;  %442 = vmatprep.subr.bf16.mxu0 %v486_v8 }
  0x10   :  { %424 = vmatprep.subr.bf16.mxu1 %v486_v8 }
  0x12   :  { %443 = vmatpush3.bf16.msra.mxu0 %v469_v37 }
  0x13   :  { %444 = vmatprep.subr.bf16.mxu0 %v486_v8 }
  0x16   :  { %445 = vmatpush3.bf16.msra.mxu0 %v470_v38 }
  0x17   :  { %446 = vmatprep.subr.bf16.mxu0 %v486_v8 }
  0x1a   :  { %447 = vmatpush3.bf16.msra.mxu0 %v471_v39 }
  0x1b   :  { %448 = vmatprep.subr.bf16.mxu0 %v486_v8 }
  0x1e   :  { %449 = vmatpush3.bf16.msra.mxu0 %v472_v40 }
  0x1f   :  { %450 = vmatprep.subr.bf16.mxu0 %v486_v8 }
  0x22   :  { %451 = vmatpush3.bf16.msra.mxu0 %v473_v41 }
  0x94   :  { %v41_v12 = vpop.xlane.xlu0 %40 }
  0x95   :  { %v46_v13 = vmul.f32 0.015625, %v41_v12 }
  0x97   :  { %v48_v14 = vadd.f32 1e-05, %v46_v13 }
  0x98   :  { %v44_v15 = vpop.xlane.xlu0 %43 }
  0x99   :  { %v47_v16 = vmul.f32 0.015625, %v44_v15  ;;  %474 = vrsqrt.f32 %v48_v14 }
  0x9b   :  { %v49_v17 = vadd.f32 1e-05, %v47_v16 }
  0x9d   :  { %476 = vrsqrt.f32 %v49_v17 }
  0xa3   :  { %v475_v23 = vpop.eup %474 }
  0xa4   :  { %v52_v25 = vmul.f32 %v475_v23, %v391_v1  ;;  %v231_v1 = vld [vmem:[#allocation2 + $0x8] sm:$0xff] }
  0xa7   :  { %v477_v24 = vpop.eup %476 }
  0xa8   :  { %v53_v26 = vmul.f32 %v477_v24, %v388_v2 }
  0xaa   :  { %v54_v28 = vpack.c.bf16 %v53_v26, %v52_v25 }
  0xac   :  { %v63_v30 = vmul.bf16 %v62_v27, %v54_v28 }
  0xae   :  { %421 = vmatmul.mubr.msk.bf16.vlgmr.msra.gmra.mrb[0].mxu1 %vm29_vm0, %v63_v30 }
  0xaf   :  { %425 = vmatpush3.bf16.msra.mxu1 %v462_v29  ;;  %432 = vmatprep.mubr.msk.bf16.mxu1 %vm487_vm1, %v486_v8 }
  0xb0   :  { %426 = vmatprep.subr.bf16.mxu1 %v486_v8 }
  0xb3   :  { %427 = vmatpush3.bf16.msra.mxu1 %v463_v31 }
  0xb4   :  { %428 = vmatprep.subr.bf16.mxu1 %v486_v8 }
  0xb7   :  { %429 = vmatpush3.bf16.msra.mxu1 %v464_v32 }
  0xb8   :  { %430 = vmatprep.subr.bf16.mxu1 %v486_v8 }
  0xbb   :  { %431 = vmatpush3.bf16.msra.mxu1 %v465_v33 }
  0xbe   :  { %433 = vmatmul.mubr.msk.bf16.vlgmr.msra.gmra.mrb[4].mxu1 %vm29_vm0, %v63_v30 }
 0x181   :  { %v133_v42 = vpop.f32.mrb[0].mxu1 }
 0x182   :  { %v371_v43 = vmul.f32 -1.442695, %v133_v42  ;;  %v422_v44 = vpop.f32.mrb[1].mxu1 }
 0x183   :  { %v136_v45 = vpop.f32.mrb[2].mxu1 }
 0x184   :  { %478 = vpow2.f32 %v371_v43  ;;  %v372_v46 = vmul.f32 -1.442695, %v136_v45  ;;  %v423_v47 = vpop.f32.mrb[3].mxu1 }
 0x186   :  { %480 = vpow2.f32 %v372_v46 }
 0x18e   :  { %v479_v48 = vpop.eup %478 }
 0x18f   :  { %v219_v49 = vadd.f32 1.0, %v479_v48 }
 0x190   :  { %v481_v50 = vpop.eup %480 }
 0x191   :  { %482 = vrcp.f32 %v219_v49  ;;  %v220_v51 = vadd.f32 1.0, %v481_v50  ;;  %v206_v52 = vpop.f32.mrb[4].mxu1 }
 0x192   :  { %v434_v53 = vpop.f32.mrb[5].mxu1 }
 0x193   :  { %484 = vrcp.f32 %v220_v51  ;;  %v209_v54 = vpop.f32.mrb[6].mxu1 }
 0x194   :  { %v435_v55 = vpop.f32.mrb[7].mxu1 }
 0x19b   :  { %v483_v56 = vpop.eup %482 }
 0x19c   :  { %v225_v57 = vmul.f32 %v483_v56, %v133_v42 }
 0x19d   :  { %v485_v58 = vpop.eup %484 }
 0x19e   :  { %v226_v59 = vmul.f32 %v485_v58, %v136_v45  ;;  %v227_v60 = vmul.f32 %v225_v57, %v206_v52 }
 0x1a0   :  { %v228_v61 = vmul.f32 %v226_v59, %v209_v54 }
 0x1a2   :  { %v229_v62 = vpack.c.bf16 %v228_v61, %v227_v60 }
 0x1a4   :  { %453 = vmatmul.mubr.bf16.vlgmr.msra.gmra.mrb[0].mxu0 %v229_v62 }
 0x277   :  { %v330_v0 = vpop.f32.mrb[0].mxu0 }
 0x278   :  { %v337_v2 = vadd.f32 %v330_v0, %v230_v63  ;;  %v454_v3 = vpop.f32.mrb[1].mxu0 }
 0x279   :  { %v333_v4 = vpop.f32.mrb[2].mxu0 }
 0x27a   :  { %339 = vst.msk [vmem:[#allocation2] sm:$0xff] %vm29_vm0, %v337_v2  ;;  %v338_v5 = vadd.f32 %v333_v4, %v231_v1  ;;  %v455_v6 = vpop.f32.mrb[3].mxu0 }
 0x27c   :  { %340 = vst.msk [vmem:[#allocation2 + $0x8] sm:$0xff] %vm29_vm0, %v338_v5 }
 0x281   :  { %v344_v7 = vld [vmem:[#allocation2] sm:$0xff] }
 0x282   :  { %v383_v8 = vpack.c.bf16 %v344_v7, %v344_v7 }
 0x283   :  { %v345_v9 = vld [vmem:[#allocation2 + $0x8] sm:$0xff] }
 0x284   :  { %355 = vst.msk [vmem:[%s613_s5] sm:$0xf] %vm354_vm2, %v383_v8  ;;  %v384_v10 = vpack.c.bf16 %v345_v9, %v345_v9 }
 0x286   :  { %356 = vst.msk [vmem:[%s613_s5 + $0x4] sm:$0xf] %vm354_vm2, %v384_v10 }

// kernel: _lambda_.24
= control target key start
LH: loop header
LB: loop body
LE: loop exit
PB: predicated region body
PF: predicated region fallthrough
CT: control target
= control target key end

     0   :  { %v145_v0 = vmov 0.0   ;;  %vm146_vm0 = vmmov 0   ;;  %vm51_vm1 = vcmask 523264   ;;  %vm104_vm2 = vcmask 27648   ;;  %s183_s1 = inlined_call_operand.vmem [shape: bf16[64,4], index: 1, kind: input, shape index: {}]   ;;  %s184_s0 = inlined_call_operand.vmem [shape: bf16[16,64], index: 0, kind: input, shape index: {}]   ;;  %s185_s2 = inlined_call_operand.vmem [shape: bf16[16,4], index: 2, kind: output, shape index: {}]  }
   0x1   :  { %126 = vmatprep.subr.bf16.mxu0 %v145_v0  ;;  %v140_v1 = vld [vmem:[%s183_s1] sm:$0xff]   ;;  %134 = vmatprep.mubr.msk.bf16.mxu0 %vm146_vm0, %v145_v0  ;;  %v141_v2 = vld [vmem:[%s183_s1 + $0x8] sm:$0xff]   ;;  %v142_v3 = vld [vmem:[%s183_s1 + $0x10] sm:$0xff]  }
   0x2   :  { %127 = vmatpush3.bf16.msra.mxu0 %v140_v1  ;;  %v143_v4 = vld [vmem:[%s183_s1 + $0x18] sm:$0xff]   ;;  %v144_v5 = vld [vmem:[%s184_s0] sm:$0xff]  }
   0x3   :  { %128 = vmatprep.subr.bf16.mxu0 %v145_v0 }
   0x6   :  { %129 = vmatpush3.bf16.msra.mxu0 %v141_v2 }
   0x7   :  { %130 = vmatprep.subr.bf16.mxu0 %v145_v0 }
   0xa   :  { %131 = vmatpush3.bf16.msra.mxu0 %v142_v3 }
   0xb   :  { %132 = vmatprep.subr.bf16.mxu0 %v145_v0 }
   0xe   :  { %133 = vmatpush3.bf16.msra.mxu0 %v143_v4 }
  0x11   :  { %135 = vmatmul.mubr.msk.bf16.vlgmr.msra.gmra.mrb[0].mxu0 %vm51_vm1, %v144_v5 }
  0xe4   :  { %v89_v6 = vpop.f32.mrb[0].mxu0 }
  0xe5   :  { %v119_v7 = vpack.c.bf16 %v89_v6, %v89_v6  ;;  %v136_v8 = vpop.f32.mrb[1].mxu0 }
  0xe6   :  { %v92_v9 = vpop.f32.mrb[2].mxu0 }
  0xe7   :  { %105 = vst.msk [vmem:[%s185_s2] sm:$0xf] %vm104_vm2, %v119_v7  ;;  %v120_v10 = vpack.c.bf16 %v92_v9, %v92_v9  ;;  %v137_v11 = vpop.f32.mrb[3].mxu0 }
  0xe9   :  { %106 = vst.msk [vmem:[%s185_s2 + $0x4] sm:$0xf] %vm104_vm2, %v120_v10 }

// kernel: _lambda_.23
= control target key start
LH: loop header
LB: loop body
LE: loop exit
PB: predicated region body
PF: predicated region fallthrough
CT: control target
= control target key end

     0   :  { %vm17_vm0 = vcmask 523264   ;;  %v38_v13 = vlaneseq  ;;  %vm50_vm1 = vcmask 519168   ;;  %s94_s0 = inlined_call_operand.vmem [shape: bf16[16,64], index: 0, kind: input, shape index: {}]   ;;  %s95_s1 = inlined_call_operand.vmem [shape: bf16[1,64], index: 1, kind: input, shape index: {}]   ;;  %s96_s2 = inlined_call_operand.vmem [shape: bf16[16,64], index: 2, kind: output, shape index: {}]  }
   0x1   :  { %v60_v0 = vld [vmem:[%s94_s0] sm:$0xff]  }
   0x2   :  { %v61_v1 = vunpack.c.l.bf16 %v60_v0  ;;  %v62_v2 = vunpack.c.h.bf16 %v60_v0  ;;  %v39_v14 = vshrl.u32 %v38_v13, 7  ;;  %v34_v15 = vld [vmem:[%s95_s1] sm:$0x1] }
   0x3   :  { %v36_v16 = vpack.i.b16 %v34_v15, %v34_v15 }
   0x4   :  { %v15_v3 = vmul.f32 %v61_v1, %v61_v1  ;;  %v16_v4 = vmul.f32 %v62_v2, %v62_v2  ;;  %v40_v17 = vsub.s32 0, %v39_v14 }
   0x6   :  { %v18_v5 = vsel %vm17_vm0, %v15_v3, 0.0  ;;  %v21_v6 = vsel %vm17_vm0, %v16_v4, 0.0  ;;  %v41_v21 = vrot.slane %v36_v16, %v40_v17 }
   0x7   :  { %19 = vadd.xlane.f32.xlu0 %v18_v5 }
   0xb   :  { %22 = vadd.xlane.f32.xlu0 %v21_v6 }
  0x94   :  { %v20_v7 = vpop.xlane.xlu0 %19 }
  0x95   :  { %v25_v8 = vmul.f32 0.015625, %v20_v7 }
  0x97   :  { %v27_v9 = vadd.f32 1e-05, %v25_v8 }
  0x98   :  { %v23_v10 = vpop.xlane.xlu0 %22 }
  0x99   :  { %v26_v11 = vmul.f32 0.015625, %v23_v10  ;;  %63 = vrsqrt.f32 %v27_v9 }
  0x9b   :  { %v28_v12 = vadd.f32 1e-05, %v26_v11 }
  0x9d   :  { %65 = vrsqrt.f32 %v28_v12 }
  0xa3   :  { %v64_v18 = vpop.eup %63 }
  0xa4   :  { %v31_v20 = vmul.f32 %v64_v18, %v61_v1 }
  0xa7   :  { %v66_v19 = vpop.eup %65 }
  0xa8   :  { %v32_v22 = vmul.f32 %v66_v19, %v62_v2 }
  0xaa   :  { %v33_v23 = vpack.c.bf16 %v32_v22, %v31_v20 }
  0xac   :  { %v42_v24 = vmul.bf16 %v41_v21, %v33_v23 }
  0xae   :  { %v57_v25 = vcombine.low %v42_v24, %v42_v24  ;;  %v58_v26 = vcombine.high %v42_v24, %v42_v24 }
  0xb0   :  { %51 = vst.msk [vmem:[%s96_s2] sm:$0xf] %vm50_vm1, %v57_v25  ;;  %52 = vst.msk [vmem:[%s96_s2 + $0x4] sm:$0xf] %vm50_vm1, %v58_v26 }

// kernel: _lambda_.25
= control target key start
LH: loop header
LB: loop body
LE: loop exit
PB: predicated region body
PF: predicated region fallthrough
CT: control target
= control target key end

     0   :  { %v408_v0 = vmov 0.0   ;;  %vm409_vm0 = vmmov 0   ;;  %vm29_vm1 = vcmask 523264   ;;  %vm301_vm2 = vcmask 519168   ;;  %s498_s1 = inlined_call_operand.vmem [shape: bf16[64,64], index: 1, kind: input, shape index: {}]   ;;  %s499_s2 = inlined_call_operand.vmem [shape: bf16[64,64], index: 2, kind: input, shape index: {}]   ;;  %s500_s0 = inlined_call_operand.vmem [shape: bf16[16,64], index: 0, kind: input, shape index: {}]   ;;  %s501_s3 = inlined_call_operand.vmem [shape: bf16[64,64], index: 3, kind: input, shape index: {}]   ;;  %s502_s4 = inlined_call_operand.vmem [shape: bf16[16,64], index: 4, kind: input, shape index: {}]   ;;  %s503_s5 = inlined_call_operand.vmem [shape: bf16[16,64], index: 5, kind: output, shape index: {}]  }
   0x1   :  { %349 = vmatprep.subr.bf16.mxu0 %v408_v0  ;;  %v387_v1 = vld [vmem:[%s498_s1] sm:$0xff]   ;;  %357 = vmatprep.mubr.msk.bf16.mxu0 %vm409_vm0, %v408_v0  ;;  %v388_v2 = vld [vmem:[%s498_s1 + $0x8] sm:$0xff]   ;;  %v389_v4 = vld [vmem:[%s498_s1 + $0x10] sm:$0xff]  }
   0x2   :  { %361 = vmatprep.subr.bf16.mxu1 %v408_v0  ;;  %369 = vmatprep.mubr.msk.bf16.mxu1 %vm409_vm0, %v408_v0  ;;  %v392_v3 = vld [vmem:[%s499_s2] sm:$0xff]   ;;  %v393_v5 = vld [vmem:[%s499_s2 + $0x8] sm:$0xff]   ;;  %v390_v6 = vld [vmem:[%s498_s1 + $0x18] sm:$0xff]  }
   0x3   :  { %350 = vmatpush3.bf16.msra.mxu0 %v387_v1  ;;  %362 = vmatpush3.bf16.msra.mxu1 %v392_v3  ;;  %v394_v7 = vld [vmem:[%s499_s2 + $0x10] sm:$0xff]   ;;  %v391_v8 = vld [vmem:[%s500_s0] sm:$0xff]   ;;  %v395_v9 = vld [vmem:[%s499_s2 + $0x18] sm:$0xff]  }
   0x4   :  { %351 = vmatprep.subr.bf16.mxu0 %v408_v0  ;;  %363 = vmatprep.subr.bf16.mxu1 %v408_v0  ;;  %v396_v10 = vld [vmem:[%s501_s3] sm:$0xff]   ;;  %v397_v11 = vld [vmem:[%s501_s3 + $0x8] sm:$0xff]   ;;  %v398_v12 = vld [vmem:[%s501_s3 + $0x10] sm:$0xff]  }
   0x5   :  { %v399_v13 = vld [vmem:[%s501_s3 + $0x18] sm:$0xff]   ;;  %v331_v14 = vld [vmem:[%s502_s4] sm:$0xff]  }
   0x6   :  { %v332_v15 = vunpack.c.l.bf16 %v331_v14  ;;  %v333_v37 = vunpack.c.h.bf16 %v331_v14 }
   0x7   :  { %352 = vmatpush3.bf16.msra.mxu0 %v388_v2  ;;  %364 = vmatpush3.bf16.msra.mxu1 %v393_v5 }
   0x8   :  { %353 = vmatprep.subr.bf16.mxu0 %v408_v0  ;;  %365 = vmatprep.subr.bf16.mxu1 %v408_v0  ;;  %30 = vst.msk [vmem:[#allocation2] sm:$0xff] %vm29_vm1, %v332_v15  ;;  %31 = vst.msk [vmem:[#allocation2 + $0x8] sm:$0xff] %vm29_vm1, %v333_v37 }
   0xb   :  { %354 = vmatpush3.bf16.msra.mxu0 %v389_v4  ;;  %366 = vmatpush3.bf16.msra.mxu1 %v394_v7 }
   0xc   :  { %355 = vmatprep.subr.bf16.mxu0 %v408_v0  ;;  %367 = vmatprep.subr.bf16.mxu1 %v408_v0 }
   0xf   :  { %356 = vmatpush3.bf16.msra.mxu0 %v390_v6  ;;  %368 = vmatpush3.bf16.msra.mxu1 %v395_v9  ;;  %v206_v38 = vld [vmem:[#allocation2] sm:$0xff]  ;;  %v207_v40 = vld [vmem:[#allocation2 + $0x8] sm:$0xff] }
  0x10   :  { %373 = vmatprep.subr.bf16.mxu0 %v408_v0 }
  0x12   :  { %358 = vmatmul.mubr.msk.bf16.vlgmr.msra.gmra.mrb[0].mxu0 %vm29_vm1, %v391_v8  ;;  %370 = vmatmul.mubr.msk.bf16.vlgmr.msra.gmra.mrb[0].mxu1 %vm29_vm1, %v391_v8 }
  0x13   :  { %381 = vmatprep.mubr.msk.bf16.mxu0 %vm409_vm0, %v408_v0  ;;  %374 = vmatpush3.bf16.msra.mxu0 %v396_v10 }
  0x14   :  { %375 = vmatprep.subr.bf16.mxu0 %v408_v0 }
  0x17   :  { %376 = vmatpush3.bf16.msra.mxu0 %v397_v11 }
  0x18   :  { %377 = vmatprep.subr.bf16.mxu0 %v408_v0 }
  0x1b   :  { %378 = vmatpush3.bf16.msra.mxu0 %v398_v12 }
  0x1c   :  { %379 = vmatprep.subr.bf16.mxu0 %v408_v0 }
  0x1f   :  { %380 = vmatpush3.bf16.msra.mxu0 %v399_v13 }
  0xe5   :  { %v109_v16 = vpop.f32.mrb[0].mxu0  ;;  %v182_v22 = vpop.f32.mrb[0].mxu1 }
  0xe6   :  { %v319_v17 = vmul.f32 -1.442695, %v109_v16  ;;  %v359_v18 = vpop.f32.mrb[1].mxu0  ;;  %v371_v23 = vpop.f32.mrb[1].mxu1 }
  0xe7   :  { %v112_v19 = vpop.f32.mrb[2].mxu0  ;;  %v185_v24 = vpop.f32.mrb[2].mxu1 }
  0xe8   :  { %400 = vpow2.f32 %v319_v17  ;;  %v320_v20 = vmul.f32 -1.442695, %v112_v19  ;;  %v360_v21 = vpop.f32.mrb[3].mxu0  ;;  %v372_v25 = vpop.f32.mrb[3].mxu1 }
  0xea   :  { %402 = vpow2.f32 %v320_v20 }
  0xf2   :  { %v401_v26 = vpop.eup %400 }
  0xf3   :  { %v195_v27 = vadd.f32 1.0, %v401_v26 }
  0xf4   :  { %v403_v28 = vpop.eup %402 }
  0xf5   :  { %404 = vrcp.f32 %v195_v27  ;;  %v196_v29 = vadd.f32 1.0, %v403_v28 }
  0xf7   :  { %406 = vrcp.f32 %v196_v29 }
  0xff   :  { %v405_v30 = vpop.eup %404 }
 0x100   :  { %v201_v31 = vmul.f32 %v405_v30, %v109_v16 }
 0x101   :  { %v407_v32 = vpop.eup %406 }
 0x102   :  { %v202_v33 = vmul.f32 %v407_v32, %v112_v19  ;;  %v203_v34 = vmul.f32 %v201_v31, %v182_v22 }
 0x104   :  { %v204_v35 = vmul.f32 %v202_v33, %v185_v24 }
 0x106   :  { %v205_v36 = vpack.c.bf16 %v204_v35, %v203_v34 }
 0x108   :  { %382 = vmatmul.mubr.msk.bf16.vlgmr.msra.gmra.mrb[4].mxu0 %vm29_vm1, %v205_v36 }
 0x1db   :  { %v277_v39 = vpop.f32.mrb[4].mxu0 }
 0x1dc   :  { %v284_v41 = vadd.f32 %v277_v39, %v206_v38  ;;  %v383_v42 = vpop.f32.mrb[5].mxu0 }
 0x1dd   :  { %v280_v43 = vpop.f32.mrb[6].mxu0 }
 0x1de   :  { %286 = vst.msk [vmem:[#allocation2] sm:$0xff] %vm29_vm1, %v284_v41  ;;  %v285_v44 = vadd.f32 %v280_v43, %v207_v40  ;;  %v384_v45 = vpop.f32.mrb[7].mxu0 }
 0x1e0   :  { %287 = vst.msk [vmem:[#allocation2 + $0x8] sm:$0xff] %vm29_vm1, %v285_v44 }
 0x1e5   :  { %v291_v46 = vld [vmem:[#allocation2] sm:$0xff] }
 0x1e6   :  { %v328_v47 = vpack.c.bf16 %v291_v46, %v291_v46 }
 0x1e7   :  { %v292_v48 = vld [vmem:[#allocation2 + $0x8] sm:$0xff] }
 0x1e8   :  { %302 = vst.msk [vmem:[%s503_s5] sm:$0xf] %vm301_vm2, %v328_v47  ;;  %v329_v49 = vpack.c.bf16 %v292_v48, %v292_v48 }
 0x1ea   :  { %303 = vst.msk [vmem:[%s503_s5 + $0x4] sm:$0xf] %vm301_vm2, %v329_v49 }

// kernel: _lambda_.27
= control target key start
LH: loop header
LB: loop body
LE: loop exit
PB: predicated region body
PF: predicated region fallthrough
CT: control target
= control target key end

     0   :  { %s143_s0 = inlined_call_operand.vmem [shape: bf16[16,64], index: 0, kind: input, shape index: {}]   ;;  %s144_s1 = inlined_call_operand.vmem [shape: bf16[1,64], index: 1, kind: input, shape index: {}]   ;;  %s145_s2 = inlined_call_operand.hbm [shape: bf16[16,64], index: 2, kind: output, shape index: {}]  }
   0x1   :  { %v73_v0 = vld [vmem:[%s143_s0] sm:$0xff]  }
   0x2   :  { %7 = vsyncpa [#allocation3], 0  ;;  %v74_v1 = vunpack.c.l.bf16 %v73_v0  ;;  %v75_v2 = vunpack.c.h.bf16 %v73_v0  ;;  %vm18_vm0 = vcmask 523264   ;;  %v39_v13 = vlaneseq  ;;  %v35_v15 = vld [vmem:[%s144_s1] sm:$0x1]  ;;  %s107_s12 = smov [#allocation2]  }
   0x3   :  { %v37_v16 = vpack.i.b16 %v35_v15, %v35_v15  ;;  %s59_s13 = sshll.u32 %s107_s12, 4  ;;  %vm51_vm1 = vcmask 519168   ;;  %s60_s13 = int_to_ptr.vmem [resolvable:$true] %s59_s13 }
   0x4   :  { %v16_v3 = vmul.f32 %v74_v1, %v74_v1  ;;  %v17_v4 = vmul.f32 %v75_v2, %v75_v2  ;;  %v40_v14 = vshrl.u32 %v39_v13, 7  ;;  %s83_s14 = scalar_lea.vmem %s60_s13, 128  ;;  %p88_p1 = scmp.lt.s32.totalorder %s60_s13, %s60_s13 }
   0x5   :  { %p84_p0 = scmp.ne.s32.totalorder %s60_s13, %s83_s14  ;;  %p89_p2 = scmp.lt.s32.totalorder %s83_s14, %s83_s14 }
   0x6   :  { %v19_v5 = vsel %vm18_vm0, %v16_v3, 0.0  ;;  %v22_v6 = vsel %vm18_vm0, %v17_v4, 0.0  ;;  %v41_v17 = vsub.s32 0, %v40_v14 }
   0x7   :  { %20 = vadd.xlane.f32.xlu0 %v19_v5  ;;  %p90_p3 = por %p89_p2, %p88_p1 }
   0x8   :  { %v42_v22 = vrot.slane %v37_v16, %v41_v17 }
   0x9   :  { %p91_p4 = pnand %p90_p3, %p84_p0 }
   0xb   :  { %23 = vadd.xlane.f32.xlu0 %v22_v6 }
  0x94   :  { %v21_v7 = vpop.xlane.xlu0 %20 }
  0x95   :  { %v26_v8 = vmul.f32 0.015625, %v21_v7 }
  0x97   :  { %v28_v9 = vadd.f32 1e-05, %v26_v8 }
  0x98   :  { %v24_v10 = vpop.xlane.xlu0 %23 }
  0x99   :  { %v27_v11 = vmul.f32 0.015625, %v24_v10  ;;  %79 = vrsqrt.f32 %v28_v9 }
  0x9b   :  { %v29_v12 = vadd.f32 1e-05, %v27_v11 }
  0x9d   :  { %81 = vrsqrt.f32 %v29_v12 }
  0xa3   :  { %v80_v18 = vpop.eup %79 }
  0xa4   :  { %v32_v20 = vmul.f32 %v80_v18, %v74_v1 }
  0xa7   :  { %v82_v19 = vpop.eup %81 }
  0xa8   :  { %v33_v21 = vmul.f32 %v82_v19, %v75_v2 }
  0xaa   :  { %v34_v23 = vpack.c.bf16 %v33_v21, %v32_v20 }
  0xac   :  { %v43_v24 = vmul.bf16 %v42_v22, %v34_v23 }
  0xae   :  { %v70_v25 = vcombine.low %v43_v24, %v43_v24  ;;  %v71_v26 = vcombine.high %v43_v24, %v43_v24 }
  0xb0   :  { %52 = vst.msk [vmem:[#allocation2] sm:$0xf] %vm51_vm1, %v70_v25  ;;  %53 = vst.msk [vmem:[#allocation2 + $0x4] sm:$0xf] %vm51_vm1, %v71_v26 }
  0xb1   :  { %94 = shalt.err (!%p91_p4)
}
  0xb2   :  { %s95_s16 = scalar_lea.hbm %s145_s2, 128 }
  0xb3   :  { %p96_p5 = scmp.ne.s32.totalorder %s145_s2, %s95_s16  ;;  %p99_p6 = scmp.lt.u32.totalorder %s95_s16, %s145_s2 }
  0xb5   :  { %p101_p7 = pnand %p99_p6, %p96_p5 }
  0xb7   :  { %104 = shalt.err (!%p101_p7)
}
  0xb8   :  { %s108_s21 = smov 64   ;;  %s109_s22 = smov 4  }
  0xb9   :  { %65 = dma.vmem_to_hbm [thread:$0]  %s60_s13, 128, %s145_s2, [#allocation3], %s108_s21, %s108_s21, %s109_s22  }
  0xba   :  { %105 = dma.done.wait [#allocation3], 128  }
  0xbb   :  { %106 = vsyncadd [#allocation3], 4294967168 }
  0xbc   :  { %69 = vsyncpa [#allocation3], 1 }

// kernel: _lambda_.26
= control target key start
LH: loop header
LB: loop body
LE: loop exit
PB: predicated region body
PF: predicated region fallthrough
CT: control target
= control target key end

     0   :  { %s1112_s21 = smov 0   ;;  %s1114_s22 = smov 0   ;;  %s1198_s0 = inlined_call_operand.vmem [shape: bf16[16,64], index: 0, kind: input, shape index: {}]   ;;  %s1199_s1 = inlined_call_operand.vmem [shape: bf16[16,4], index: 1, kind: input, shape index: {}]   ;;  %s1200_s2 = inlined_call_operand.vmem [shape: bf16[4,64,64], index: 2, kind: input, shape index: {}]   ;;  %s1201_s3 = inlined_call_operand.vmem [shape: bf16[4,64,64], index: 3, kind: input, shape index: {}]   ;;  %s1202_s4 = inlined_call_operand.vmem [shape: bf16[4,64,64], index: 4, kind: input, shape index: {}]   ;;  %s1203_s5 = inlined_call_operand.vmem [shape: bf16[16,64], index: 5, kind: input, shape index: {}]   ;;  %s1204_s6 = inlined_call_operand.vmem [shape: bf16[16,64], index: 6, kind: output, shape index: {}]  }
   0x1   :  { %s1116_s23 = smov 0  }
   0x2 LB: > { %s31_s24 = sadd.s32 1, %s1068_s22  ;;  %p901_p0 = scmp.ge.s32.totalorder %s1072_s23, 1  ;;  %s1072_s23 = sphi %s1116_s23, %s16_s23   ;;  %s1068_s22 = sphi %s1114_s22, %s1206_s22   ;;  %s1064_s21 = sphi %s1112_s21, %s1205_s21  }
   0x3   : > { %p33_p1 = scmp.ge.s32.totalorder %s31_s24, 4  ;;  %p301_p2 = scmp.lt.s32.totalorder %s1072_s23, 5 }
   0x5   : > { %s1208_s24 = smov (%p33_p1, %s31_s24), 0  ;;  %p302_p3 = pnand %p901_p0, %p301_p2 }
   0x6   : > { %p378_p4 = scmp.lt.s32.totalorder (!%p302_p3), %s1064_s21, 3  ;;  %p417_p5 = scmp.eq.s32.totalorder (!%p302_p3), %s1064_s21, 0 }
   0x7   : > { %305 = sbr.rel (%p302_p3) target bundleno = 572 (0x23c), region = 44 }
   0xe   : > { %s379_s25 = scalar_select %p378_p4, %s1064_s21, 3 }
   0xf   : > { %422 = sbr.rel (!%p417_p5) target bundleno = 22 (0x16), region = 48  ;;  %v942_v0 = vld [vmem:[%s1203_s5] sm:$0xff] (%p417_p5)   ;;  %vm427_vm0 = vcmask (%p417_p5), 523264  }
  0x10   : > { %s934_s26 = sshll.u32 %s379_s25, 5  ;;  %v943_v1 = vunpack.c.l.bf16 (%p417_p5), %v942_v0  ;;  %v944_v2 = vunpack.c.h.bf16 (%p417_p5), %v942_v0 }
  0x11   : > { %s1138_s29 = scalar_lea.vmem %s1200_s2, %s934_s26  ;;  %s1143_s8 = scalar_lea.vmem %s1201_s3, %s934_s26 }
  0x12   : > { %s1148_s11 = scalar_lea.vmem %s1202_s4, %s934_s26  ;;  %428 = vst.msk [vmem:[#allocation2] sm:$0xff] (%p417_p5), %vm427_vm0, %v943_v1  ;;  %429 = vst.msk [vmem:[#allocation2 + $0x8] sm:$0xff] (%p417_p5), %vm427_vm0, %v944_v2 }
  0x16 PF: > { %v946_v3 = vld [vmem:[%s1199_s1] sm:$0xff]   ;;  %v437_v4 = vlaneseq  ;;  %vm443_vm1 = vcmask 31744   ;;  %v439_v7 = vstv %s1064_s21  ;;  %v1074_v9 = vmov 0.0   ;;  %v1031_v12 = vld [vmem:[%s1138_s29 + $0x8] sm:$0xff]   ;;  %v1033_v17 = vld [vmem:[%s1138_s29 + $0x10] sm:$0xff]   ;;  %p725_p6 = scmp.eq.s32.totalorder %s1064_s21, 3 }
  0x17   : > { %v1029_v5 = vld [vmem:[%s1138_s29] sm:$0xff]   ;;  %v947_v6 = vunpack.c.l.bf16 %v946_v3  ;;  %v948_v8 = vunpack.c.h.bf16 %v946_v3  ;;  %964 = vmatprep.subr.bf16.mxu0 %v1074_v9  ;;  %976 = vmatprep.subr.bf16.mxu1 %v1074_v9  ;;  %v1032_v13 = vld [vmem:[%s1143_s8 + $0x8] sm:$0xff]   ;;  %vm1075_vm3 = vmmov 0   ;;  %v1034_v19 = vld [vmem:[%s1143_s8 + $0x10] sm:$0xff]   ;;  %vm494_vm4 = vcmask 523264  }
  0x18   : > { %v438_v10 = vand.u32 127, %v437_v4  ;;  %965 = vmatpush3.bf16.msra.mxu0 %v1029_v5  ;;  %v1030_v11 = vld [vmem:[%s1143_s8] sm:$0xff]   ;;  %972 = vmatprep.mubr.msk.bf16.mxu0 %vm1075_vm3, %v1074_v9  ;;  %v1035_v20 = vld [vmem:[%s1138_s29 + $0x18] sm:$0xff]   ;;  %v1076_v23 = vmov 0   ;;  %vm450_vm5 = vcmask 7168   ;;  %v1039_v29 = vld [vmem:[%s1148_s11 + $0x8] sm:$0xff]  }
  0x19   : > { %966 = vmatprep.subr.bf16.mxu0 %v1074_v9  ;;  %977 = vmatpush3.bf16.msra.mxu1 %v1030_v11  ;;  %v1036_v21 = vld [vmem:[%s1143_s8 + $0x18] sm:$0xff]   ;;  %v1037_v22 = vld [vmem:[%s1198_s0] sm:$0xff]   ;;  %v1040_v30 = vld [vmem:[%s1148_s11 + $0x10] sm:$0xff]   ;;  %vm740_vm6 = vcmask (%p725_p6), 519168  }
  0x1a   : > { %vm440_vm2 = vcmp.eq.s32.totalorder %v438_v10, %v439_v7  ;;  %978 = vmatprep.subr.bf16.mxu1 %v1074_v9  ;;  %984 = vmatprep.mubr.msk.bf16.mxu1 %vm1075_vm3, %v1074_v9  ;;  %v1038_v28 = vld [vmem:[%s1148_s11] sm:$0xff]   ;;  %v1041_v31 = vld [vmem:[%s1148_s11 + $0x18] sm:$0xff]   ;;  %v644_v61 = vld [vmem:[#allocation2 + $0x8] sm:$0xff] }
  0x1b   : > { %v441_v14 = vsel %vm440_vm2, %v947_v6, 0.0  ;;  %v442_v15 = vsel %vm440_vm2, %v948_v8, 0.0  ;;  %1027 = vset.pattern.permute.xlu1 %v1076_v23  ;;  %1028 = vset.pattern.permute.xlu0 %v1076_v23  ;;  %v643_v59 = vld [vmem:[#allocation2] sm:$0xff] }
  0x1c   : > { %v444_v16 = vsel %vm443_vm1, %v441_v14, 0.0  ;;  %967 = vmatpush3.bf16.msra.mxu0 %v1031_v12  ;;  %v447_v18 = vsel %vm443_vm1, %v442_v15, 0.0 }
  0x1d   : > { %445 = vadd.xlane.f32.xlu0 %v444_v16  ;;  %968 = vmatprep.subr.bf16.mxu0 %v1074_v9 }
  0x1e   : > { %979 = vmatpush3.bf16.msra.mxu1 %v1032_v13 }
  0x1f   : > { %980 = vmatprep.subr.bf16.mxu1 %v1074_v9 }
  0x20   : > { %969 = vmatpush3.bf16.msra.mxu0 %v1033_v17 }
  0x21   : > { %448 = vadd.xlane.f32.xlu0 %v447_v18  ;;  %970 = vmatprep.subr.bf16.mxu0 %v1074_v9 }
  0x22   : > { %981 = vmatpush3.bf16.msra.mxu1 %v1034_v19 }
  0x23   : > { %982 = vmatprep.subr.bf16.mxu1 %v1074_v9 }
  0x24   : > { %971 = vmatpush3.bf16.msra.mxu0 %v1035_v20 }
  0x25   : > { %988 = vmatprep.subr.bf16.mxu0 %v1074_v9 }
  0x26   : > { %983 = vmatpush3.bf16.msra.mxu1 %v1036_v21 }
  0x27   : > { %973 = vmatmul.mubr.msk.bf16.vlgmr.msra.gmra.mrb[0].mxu0 %vm494_vm4, %v1037_v22 }
  0x28   : > { %996 = vmatprep.mubr.msk.bf16.mxu0 %vm1075_vm3, %v1074_v9  ;;  %989 = vmatpush3.bf16.msra.mxu0 %v1038_v28 }
  0x29   : > { %985 = vmatmul.mubr.msk.bf16.vlgmr.msra.gmra.mrb[0].mxu1 %vm494_vm4, %v1037_v22  ;;  %990 = vmatprep.subr.bf16.mxu0 %v1074_v9 }
  0x2c   : > { %991 = vmatpush3.bf16.msra.mxu0 %v1039_v29 }
  0x2d   : > { %992 = vmatprep.subr.bf16.mxu0 %v1074_v9 }
  0x30   : > { %993 = vmatpush3.bf16.msra.mxu0 %v1040_v30 }
  0x31   : > { %994 = vmatprep.subr.bf16.mxu0 %v1074_v9 }
  0x34   : > { %995 = vmatpush3.bf16.msra.mxu0 %v1041_v31 }
  0xaa   : > { %v446_v24 = vpop.xlane.xlu0 %445 }
  0xab   : > { %451 = vst.msk [vmem:[#allocation3] sm:$0xff] %vm450_vm5, %v446_v24 }
  0xae   : > { %v449_v25 = vpop.xlane.xlu0 %448 }
  0xaf   : > { %452 = vst.msk [vmem:[#allocation3 + $0x8] sm:$0xff] %vm450_vm5, %v449_v25 }
  0xb2   : > { %v455_v26 = vld [vmem:[#allocation3] sm:$0xff] }
  0xb3   : > { %541 = vperm.xlu1 %1027, %v455_v26  }
  0xb6   : > { %v456_v27 = vld [vmem:[#allocation3 + $0x8] sm:$0xff] }
  0xb7   : > { %546 = vperm.xlu1 %1027, %v456_v27  }
  0xfa   : > { %v532_v32 = vpop.f32.mrb[0].mxu0 }
  0xfb   : > { %v974_v33 = vpop.f32.mrb[1].mxu0 }
  0xfc   : > { %v617_v34 = vpop.f32.mrb[0].mxu1  ;;  %v535_v35 = vpop.f32.mrb[2].mxu0 }
  0xfd   : > { %v975_v36 = vpop.f32.mrb[3].mxu0  ;;  %v986_v37 = vpop.f32.mrb[1].mxu1 }
  0xfe   : > { %v620_v38 = vpop.f32.mrb[2].mxu1 }
  0xff   : > { %v987_v39 = vpop.f32.mrb[3].mxu1 }
 0x132   : > { %v542_v40 = vpop.permute.xlu1 %541 }
 0x133   : > { %v549_v41 = vmul.f32 %v542_v40, %v532_v32  ;;  %v624_v51 = vmul.f32 %v617_v34, %v542_v40 }
 0x135   : > { %v920_v42 = vmul.f32 -1.442695, %v549_v41 }
 0x136   : > { %v547_v43 = vpop.permute.xlu1 %546 }
 0x137   : > { %1042 = vpow2.f32 %v920_v42  ;;  %v550_v44 = vmul.f32 %v547_v43, %v535_v35  ;;  %v625_v55 = vmul.f32 %v620_v38, %v547_v43 }
 0x139   : > { %v921_v45 = vmul.f32 -1.442695, %v550_v44 }
 0x13b   : > { %1044 = vpow2.f32 %v921_v45 }
 0x141   : > { %v1043_v46 = vpop.eup %1042 }
 0x142   : > { %v632_v47 = vadd.f32 1.0, %v1043_v46 }
 0x144   : > { %1046 = vrcp.f32 %v632_v47 }
 0x145   : > { %v1045_v48 = vpop.eup %1044 }
 0x146   : > { %v633_v49 = vadd.f32 1.0, %v1045_v48 }
 0x148   : > { %1048 = vrcp.f32 %v633_v49 }
 0x14e   : > { %v1047_v50 = vpop.eup %1046 }
 0x14f   : > { %v638_v52 = vmul.f32 %v1047_v50, %v549_v41 }
 0x151   : > { %v640_v53 = vmul.f32 %v638_v52, %v624_v51 }
 0x152   : > { %v1049_v54 = vpop.eup %1048 }
 0x153   : > { %v639_v56 = vmul.f32 %v1049_v54, %v550_v44 }
 0x155   : > { %v641_v57 = vmul.f32 %v639_v56, %v625_v55 }
 0x157   : > { %v642_v58 = vpack.c.bf16 %v641_v57, %v640_v53 }
 0x159   : > { %997 = vmatmul.mubr.msk.bf16.vlgmr.msra.gmra.mrb[4].mxu0 %vm494_vm4, %v642_v58 }
 0x22b   : > { %729 = sbr.rel (!%p725_p6) target bundleno = 572 (0x23c), region = 56 }
 0x22c   : > { %v714_v60 = vpop.f32.mrb[4].mxu0 }
 0x22d   : > { %v721_v62 = vadd.f32 %v714_v60, %v643_v59  ;;  %v998_v63 = vpop.f32.mrb[5].mxu0 }
 0x22e   : > { %v717_v0 = vpop.f32.mrb[6].mxu0 }
 0x22f   : > { %723 = vst.msk [vmem:[#allocation2] sm:$0xff] %vm494_vm4, %v721_v62  ;;  %v722_v1 = vadd.f32 %v717_v0, %v644_v61  ;;  %v999_v2 = vpop.f32.mrb[7].mxu0 }
 0x231   : > { %724 = vst.msk [vmem:[#allocation2 + $0x8] sm:$0xff] %vm494_vm4, %v722_v1 }
 0x236   : > { %v730_v3 = vld [vmem:[#allocation2] sm:$0xff] }
 0x237   : > { %v939_v5 = vpack.c.bf16 %v730_v3, %v730_v3 }
 0x238   : > { %v731_v4 = vld [vmem:[#allocation2 + $0x8] sm:$0xff] }
 0x239   : > { %v940_v6 = vpack.c.bf16 %v731_v4, %v731_v4  ;;  %741 = vst.msk [vmem:[%s1204_s6] sm:$0xf] %vm740_vm6, %v939_v5 }
 0x23b   : > { %742 = vst.msk [vmem:[%s1204_s6 + $0x4] sm:$0xf] %vm740_vm6, %v940_v6 }
 0x23c PF: > { %s16_s23 = sadd.s32 1, %s1072_s23   ;;  %s1205_s21 = smov %s1068_s22 }
 0x23d   : > { %p13_p7 = scmp.ge.s32.totalorder %s16_s23, 6   ;;  %s1206_s22 = smov %s1208_s24 }
 0x23f   :  { %15 = sbr.rel (!%p13_p7) target bundleno = 2 (0x2), region = 101 }

</bundles_post_ra>
